<compile_context>
chip_gen: v5e
topology: v5e:2x2
jax: 0.10.0
libtpu: 0.0.40
codegen_flags: <defaults>
</compile_context>

<pallas_src>
import functools
import math

import jax
import jax.numpy as jnp
import numpy as np
from jax import lax
from jax.experimental import pallas as pl
from jax.experimental.pallas import tpu as pltpu


def _attention_tile(x_q, mask_row, k_sc, v_sc,
                    wq_ref, bq_ref, wo_ref, bo_ref,
                    out_ref, amax_ref, *, n_heads, compute_dtype):
    """Attention for one (batch, q-tile) grid step.

    x_q: (qt, dim) activations in `compute_dtype`.  K/V projections for the
    full key sequence already live in VMEM scratch as (n_heads, klen, dph).
    Per-head weight slabs avoid lane-dim slicing of activations and the
    concatenate; each head issues the same MXU stream a batched einsum would,
    while keeping only one head's (qt, klen) slab live at a time.
    """
    f32 = jnp.float32
    qt = x_q.shape[0]
    klen = k_sc.shape[1]
    dim = out_ref.shape[-1]

    masked = mask_row == 0.0                                   # (1|qt, klen)

    out_acc = jnp.zeros((qt, dim), dtype=f32)
    wsum = jnp.zeros((qt, klen), dtype=f32)                    # sum over heads

    for h in range(n_heads):                                   # static, small
        # Q projection for this head (1/sqrt(dph) folded into wq/bq by wrapper)
        qh = (jnp.dot(x_q, wq_ref[h], preferred_element_type=f32)
              + bq_ref[h]).astype(compute_dtype)               # (qt, dph)
        kh = k_sc[h]                                           # (klen, dph)
        vh = v_sc[h]                                           # (klen, dph)

        s = jnp.einsum("qd,kd->qk", qh, kh,
                       preferred_element_type=f32)             # (qt, klen)
        s = jnp.where(masked, -jnp.inf, s)                     # masked_fill_

        s_max = jnp.max(s, axis=-1, keepdims=True)
        p = jnp.exp(s - s_max)
        denom = jnp.sum(p, axis=-1, keepdims=True)
        w = p * pl.reciprocal(denom, approx=True)              # softmax (f32)
        # dropout(training=False) == identity (eval mode).

        wsum = wsum + w
        ctx_h = jnp.dot(w.astype(compute_dtype), vh,
                        preferred_element_type=f32)            # (qt, dph)
        # out_lin applied per head and accumulated (== unshape + out_lin).
        out_acc = out_acc + jnp.dot(ctx_h.astype(compute_dtype), wo_ref[h],
                                    preferred_element_type=f32)

    out_ref[...] = (out_acc + bo_ref[...]).astype(out_ref.dtype)

    # attn_scores = weights.sum(over heads) / n_heads; the uniform 1/n_heads
    # scale does not change the argmax, so it is skipped.  First-occurrence
    # argmax over klen (matches jnp.argmax).
    ids = lax.broadcasted_iota(jnp.int32, (qt, klen), 1)
    row_max = jnp.max(wsum, axis=-1, keepdims=True)
    first_max = jnp.min(jnp.where(wsum == row_max, ids, klen), axis=-1)
    amax_ref[...] = first_max[None, :].astype(jnp.int32)       # (1, qt)


def _mha_self_kernel(n_heads, qt, compute_dtype,
                     x_ref, mask_ref,
                     wq_ref, bq_ref, wk_ref, bk_ref, wv_ref, bv_ref,
                     wo_ref, bo_ref,
                     out_ref, amax_ref,
                     k_sc, v_sc):
    """Self-attention: one input sequence (DMA'd once per batch element)."""
    i = pl.program_id(1)

    # K/V projections for the whole key sequence: computed once per batch
    # element (first q-tile) and cached in VMEM scratch for the other tiles.
    @pl.when(i == 0)
    def _project_kv():
        x_full = x_ref[...]                                    # (klen, dim)
        for h in range(n_heads):
            k_sc[h] = (jnp.dot(x_full, wk_ref[h],
                               preferred_element_type=jnp.float32)
                       + bk_ref[h]).astype(compute_dtype)
            v_sc[h] = (jnp.dot(x_full, wv_ref[h],
                               preferred_element_type=jnp.float32)
                       + bv_ref[h]).astype(compute_dtype)

    # Q rows for this tile are a slice of the already-resident block.
    row0 = pl.multiple_of(i * qt, qt)
    x_q = x_ref[pl.ds(row0, qt), :]                            # (qt, dim)
    _attention_tile(x_q, mask_ref[...], k_sc, v_sc,
                    wq_ref, bq_ref, wo_ref, bo_ref, out_ref, amax_ref,
                    n_heads=n_heads, compute_dtype=compute_dtype)


def _mha_cross_kernel(n_heads, qt, compute_dtype,
                      xq_ref, xk_ref, xv_ref, mask_ref,
                      wq_ref, bq_ref, wk_ref, bk_ref, wv_ref, bv_ref,
                      wo_ref, bo_ref,
                      out_ref, amax_ref,
                      k_sc, v_sc):
    """Cross-attention: separate key/value source sequences."""
    i = pl.program_id(1)

    @pl.when(i == 0)
    def _project_kv():
        xk = xk_ref[...]
        xv = xv_ref[...]
        for h in range(n_heads):
            k_sc[h] = (jnp.dot(xk, wk_ref[h],
                               preferred_element_type=jnp.float32)
                       + bk_ref[h]).astype(compute_dtype)
            v_sc[h] = (jnp.dot(xv, wv_ref[h],
                               preferred_element_type=jnp.float32)
                       + bv_ref[h]).astype(compute_dtype)

    _attention_tile(xq_ref[...], mask_ref[...], k_sc, v_sc,
                    wq_ref, bq_ref, wo_ref, bo_ref, out_ref, amax_ref,
                    n_heads=n_heads, compute_dtype=compute_dtype)


def multi_head_attention(params, query, key=None, value=None, mask=None, *,
                         n_heads, compute_dtype=jnp.bfloat16, q_tile=128):
    """Pallas wrapper reproducing MultiHeadAttention.forward (eval mode).

    Returns (out_lin(context) [bs, qlen, dim],
             argmax over klen of head-averaged attention weights [bs, qlen]).
    """
    f32 = jnp.float32
    cdt = compute_dtype
    bs, qlen, dim = query.shape
    assert dim % n_heads == 0
    dph = dim // n_heads
    self_attn = key is None
    klen = qlen if self_attn else key.shape[1]

    # q-tile bounds per-step VMEM (scores are (qt, klen) per head) and gives
    # the grid depth beyond bs.  Falls back to whole qlen if it doesn't divide.
    qt = q_tile if (qlen % q_tile == 0) else qlen
    nq = qlen // qt
    grid = (bs, nq)

    # --- parameters: per-head weight slabs, 1/sqrt(dph) folded into Q path.
    scale = 1.0 / math.sqrt(dph)

    def per_head_in(w):   # torch Linear weight (out, in) -> (h, in=dim, dph)
        return jnp.transpose(w.astype(f32).T.reshape(dim, n_heads, dph),
                             (1, 0, 2))

    wq_h = (per_head_in(params["wq"]) * scale).astype(cdt)
    bq_h = params["bq"].astype(f32).reshape(n_heads, 1, dph) * scale
    wk_h = per_head_in(params["wk"]).astype(cdt)
    bk_h = params["bk"].astype(f32).reshape(n_heads, 1, dph)
    wv_h = per_head_in(params["wv"]).astype(cdt)
    bv_h = params["bv"].astype(f32).reshape(n_heads, 1, dph)
    wo_h = params["wo"].astype(f32).T.reshape(n_heads, dph, dim).astype(cdt)
    bo = params["bo"].astype(f32).reshape(1, dim)

    # --- mask: 2-D padding masks are passed as one (1, klen) row per batch
    # (no dense (bs, qlen, klen) slab); 3-D masks are tiled per q-tile.
    if mask.ndim == 2:
        mask_arr = mask.reshape(bs, 1, klen).astype(f32)
        mask_spec = pl.BlockSpec((None, 1, klen), lambda b, i: (b, 0, 0))
    else:
        mask_arr = mask.astype(f32)
        mask_spec = pl.BlockSpec((None, qt, klen), lambda b, i: (b, i, 0))

    def const_spec(shape):
        n = len(shape)
        return pl.BlockSpec(shape, lambda b, i: (0,) * n)

    # Constant index maps -> fetched once by the pipeline.  (On VMEM-tight
    # chips these could additionally be single-buffered via
    # pipeline_mode=pl.Buffered(1).)
    weight_specs = [
        const_spec((n_heads, dim, dph)),   # wq
        const_spec((n_heads, 1, dph)),     # bq
        const_spec((n_heads, dim, dph)),   # wk
        const_spec((n_heads, 1, dph)),     # bk
        const_spec((n_heads, dim, dph)),   # wv
        const_spec((n_heads, 1, dph)),     # bv
        const_spec((n_heads, dph, dim)),   # wo
        const_spec((1, dim)),              # bo
    ]
    weight_args = (wq_h, bq_h, wk_h, bk_h, wv_h, bv_h, wo_h, bo)

    out_specs = [
        pl.BlockSpec((None, qt, dim), lambda b, i: (b, i, 0)),
        pl.BlockSpec((None, 1, qt), lambda b, i: (b, 0, i)),   # lane-dense amax
    ]
    out_shape = (
        jax.ShapeDtypeStruct((bs, qlen, dim), query.dtype),
        jax.ShapeDtypeStruct((bs, 1, qlen), jnp.int32),
    )
    scratch_shapes = [
        pltpu.VMEM((n_heads, klen, dph), cdt),    # cached K projection
        pltpu.VMEM((n_heads, klen, dph), cdt),    # cached V projection
    ]

    if self_attn:
        kernel = functools.partial(_mha_self_kernel, n_heads, qt, cdt)
        in_specs = ([pl.BlockSpec((None, klen, dim), lambda b, i: (b, 0, 0)),
                     mask_spec] + weight_specs)
        args = (query.astype(cdt), mask_arr) + weight_args
    else:
        kernel = functools.partial(_mha_cross_kernel, n_heads, qt, cdt)
        in_specs = ([pl.BlockSpec((None, qt, dim), lambda b, i: (b, i, 0)),
                     pl.BlockSpec((None, klen, dim), lambda b, i: (b, 0, 0)),
                     pl.BlockSpec((None, klen, dim), lambda b, i: (b, 0, 0)),
                     mask_spec] + weight_specs)
        args = (query.astype(cdt), key.astype(cdt), value.astype(cdt),
                mask_arr) + weight_args

    out, amax = pl.pallas_call(
        kernel,
        out_shape=out_shape,
        grid_spec=pltpu.PrefetchScalarGridSpec(
            num_scalar_prefetch=0,
            grid=grid,
            in_specs=in_specs,
            out_specs=out_specs,
            scratch_shapes=scratch_shapes),
        compiler_params=pltpu.CompilerParams(
            # batch axis independent (megacore); the q-tile axis carries the
            # cached K/V scratch so it must stay "arbitrary".
            dimension_semantics=("parallel", "arbitrary"),
            # Raise the scoped-VMEM default (16 MiB v5e / 32 MiB v6e, v7x)
            # while leaving headroom under v7x's 64 MiB physical VMEM.
            vmem_limit_bytes=48 * 1024 * 1024),
    )(*args)

    return out, amax[:, 0, :]


def _reference(params, query, key, value, mask, n_heads, compute_dtype):
    """Pure-JAX reference mirroring the PyTorch forward (eval mode) at the
    same matmul precision as the kernel (bf16 operands, f32 accumulation)."""
    f32 = jnp.float32
    cdt = compute_dtype
    bs, qlen, dim = query.shape
    dph = dim // n_heads
    scale = 1.0 / math.sqrt(dph)

    def lin(x, w, b, s=1.0):
        wt = (w.astype(f32).T * s).astype(cdt)                 # (in, out)
        return (jnp.einsum("bqd,de->bqe", x.astype(cdt), wt,
                           preferred_element_type=f32) + b.astype(f32) * s)

    def shape(x):
        return x.reshape(bs, -1, n_heads, dph).transpose(0, 2, 1, 3)

    xk = query if key is None else key
    xv = query if key is None else value

    q = shape(lin(query, params["wq"], params["bq"], scale)).astype(cdt)
    k = shape(lin(xk, params["wk"], params["bk"])).astype(cdt)
    v = shape(lin(xv, params["wv"], params["bv"])).astype(cdt)

    scores = jnp.einsum("bhqd,bhkd->bhqk", q, k, preferred_element_type=f32)
    if mask.ndim == 2:
        m = (mask == 0)[:, None, None, :]
    else:
        m = (mask == 0)[:, None, :, :]
    scores = jnp.where(m, -jnp.inf, scores)
    weights = jax.nn.softmax(scores, axis=-1)                  # f32

    ctx = jnp.einsum("bhqk,bhkd->bhqd", weights.astype(cdt), v,
                     preferred_element_type=f32)
    ctx = ctx.transpose(0, 2, 1, 3).reshape(bs, qlen, dim)
    wo_t = params["wo"].astype(f32).T.astype(cdt)
    out = (jnp.einsum("bqd,de->bqe", ctx.astype(cdt), wo_t,
                      preferred_element_type=f32) + params["bo"].astype(f32))

    attn_scores = weights.sum(axis=1) / n_heads
    return out, jnp.argmax(attn_scores, axis=-1), attn_scores


if __name__ == "__main__":
    # Small shapes consistent with the module: self-attention path (key=None).
    bs, qlen, dim, n_heads = 2, 8, 32, 4
    dropout = 0.1   # unused in eval mode

    key0 = jax.random.PRNGKey(0)
    k_q, k_wq, k_wk, k_wv, k_wo, k_b = jax.random.split(key0, 6)

    query = jax.random.normal(k_q, (bs, qlen, dim), dtype=jnp.float32)

    def init_w(k):   # torch Linear weight layout: (out_features, in_features)
        return 0.25 * jax.random.normal(k, (dim, dim), dtype=jnp.float32)

    bks = jax.random.split(k_b, 4)
    params = {
        "wq": init_w(k_wq),
        "bq": 0.05 * jax.random.normal(bks[0], (dim,), dtype=jnp.float32),
        "wk": init_w(k_wk),
        "bk": 0.05 * jax.random.normal(bks[1], (dim,), dtype=jnp.float32),
        "wv": init_w(k_wv),
        "bv": 0.05 * jax.random.normal(bks[2], (dim,), dtype=jnp.float32),
        "wo": init_w(k_wo),
        "bo": 0.05 * jax.random.normal(bks[3], (dim,), dtype=jnp.float32),
    }

    # 2-D padding mask (bs, klen): 1 = attend, 0 = masked.
    lengths = jnp.array([qlen, 5])
    mask = (jnp.arange(qlen)[None, :] < lengths[:, None]).astype(jnp.float32)

    out, amax = multi_head_attention(params, query, mask=mask, n_heads=n_heads)
    out = jax.block_until_ready(out)
    amax = jax.block_until_ready(amax)

    ref_out, ref_amax, ref_attn = _reference(params, query, None, None, mask,
                                             n_heads, jnp.bfloat16)

    np.testing.assert_allclose(np.asarray(out), np.asarray(ref_out),
                               rtol=1e-2, atol=1e-2)

    amax_np, ref_amax_np = np.asarray(amax), np.asarray(ref_amax)
    if not np.array_equal(amax_np, ref_amax_np):
        # Accept disagreement only at numerical ties of the head-averaged
        # attention weights (approx reciprocal may reorder exact ties).
        attn_np = np.asarray(ref_attn)
        b_idx, q_idx = np.nonzero(amax_np != ref_amax_np)
        got = attn_np[b_idx, q_idx, amax_np[b_idx, q_idx]]
        best = attn_np[b_idx, q_idx].max(axis=-1)
        np.testing.assert_allclose(got, best, rtol=0, atol=1e-3)

    print("KERNEL_OK")
</pallas_src>

<mosaic_0001>
module attributes {stable_mosaic.version = 11 : i64} {
  func.func @_mha_self_kernel(%arg0: i32, %arg1: i32, %arg2: memref<1x8x32xbf16, #tpu.memory_space<vmem>>, %arg3: memref<1x1x8xf32, #tpu.memory_space<vmem>>, %arg4: memref<4x32x8xbf16, #tpu.memory_space<vmem>>, %arg5: memref<4x1x8xf32, #tpu.memory_space<vmem>>, %arg6: memref<4x32x8xbf16, #tpu.memory_space<vmem>>, %arg7: memref<4x1x8xf32, #tpu.memory_space<vmem>>, %arg8: memref<4x32x8xbf16, #tpu.memory_space<vmem>>, %arg9: memref<4x1x8xf32, #tpu.memory_space<vmem>>, %arg10: memref<4x8x32xbf16, #tpu.memory_space<vmem>>, %arg11: memref<1x32xf32, #tpu.memory_space<vmem>>, %arg12: memref<1x8x32xf32, #tpu.memory_space<vmem>>, %arg13: memref<1x1x8xi32, #tpu.memory_space<vmem>>, %arg14: memref<4x8x8xbf16, #tpu.memory_space<vmem>>, %arg15: memref<4x8x8xbf16, #tpu.memory_space<vmem>>) attributes {dimension_semantics = [#tpu.dimension_semantics<parallel>, #tpu.dimension_semantics<arbitrary>], iteration_bounds = array<i64: 2, 1>, scalar_prefetch = 0 : i64, scratch_operands = 2 : i64, tpu.core_type = #tpu.core_type<tc>, window_params = [{transform_indices = @transform_0, window_bounds = array<i64: 1, 8, 32>}, {transform_indices = @transform_1, window_bounds = array<i64: 1, 1, 8>}, {pipeline_mode = #tpu.pipeline_mode<synchronous>, transform_indices = @transform_2, window_bounds = array<i64: 4, 32, 8>}, {pipeline_mode = #tpu.pipeline_mode<synchronous>, transform_indices = @transform_3, window_bounds = array<i64: 4, 1, 8>}, {pipeline_mode = #tpu.pipeline_mode<synchronous>, transform_indices = @transform_4, window_bounds = array<i64: 4, 32, 8>}, {pipeline_mode = #tpu.pipeline_mode<synchronous>, transform_indices = @transform_5, window_bounds = array<i64: 4, 1, 8>}, {pipeline_mode = #tpu.pipeline_mode<synchronous>, transform_indices = @transform_6, window_bounds = array<i64: 4, 32, 8>}, {pipeline_mode = #tpu.pipeline_mode<synchronous>, transform_indices = @transform_7, window_bounds = array<i64: 4, 1, 8>}, {pipeline_mode = #tpu.pipeline_mode<synchronous>, transform_indices = @transform_8, window_bounds = array<i64: 4, 8, 32>}, {pipeline_mode = #tpu.pipeline_mode<synchronous>, transform_indices = @transform_9, window_bounds = array<i64: 1, 32>}, {transform_indices = @transform_10, window_bounds = array<i64: 1, 8, 32>}, {transform_indices = @transform_11, window_bounds = array<i64: 1, 1, 8>}]} {
    %c0_i32 = arith.constant 0 : i32
    %0 = arith.cmpi eq, %arg1, %c0_i32 : i32
    %1 = arith.extui %0 : i1 to i32
    %c0_i32_0 = arith.constant 0 : i32
    %2 = arith.cmpi ne, %1, %c0_i32_0 : i32
    scf.if %2 {
      %c0_103 = arith.constant 0 : index
      %c0_104 = arith.constant 0 : index
      %c0_105 = arith.constant 0 : index
      %172 = vector.load %arg2[%c0_103, %c0_104, %c0_105] : memref<1x8x32xbf16, #tpu.memory_space<vmem>>, vector<1x8x32xbf16>
      %173 = vector.shape_cast %172 : vector<1x8x32xbf16> to vector<8x32xbf16>
      %c0_106 = arith.constant 0 : index
      %c0_107 = arith.constant 0 : index
      %c0_108 = arith.constant 0 : index
      %174 = vector.load %arg6[%c0_106, %c0_107, %c0_108] : memref<4x32x8xbf16, #tpu.memory_space<vmem>>, vector<1x32x8xbf16>
      %175 = vector.shape_cast %174 : vector<1x32x8xbf16> to vector<32x8xbf16>
      %cst_109 = arith.constant dense<0.000000e+00> : vector<8x8xf32>
      %176 = tpu.matmul %173, %175, %cst_109 {dimension_numbers = #tpu.dot_dimension_numbers<[1], [0], [0], [1], [0, 0, 1, 1], [], []>} : vector<8x32xbf16>, vector<32x8xbf16>, vector<8x8xf32> -> vector<8x8xf32>
      %c0_110 = arith.constant 0 : index
      %c0_111 = arith.constant 0 : index
      %c0_112 = arith.constant 0 : index
      %177 = vector.load %arg7[%c0_110, %c0_111, %c0_112] : memref<4x1x8xf32, #tpu.memory_space<vmem>>, vector<1x1x8xf32>
      %178 = vector.shape_cast %177 : vector<1x1x8xf32> to vector<1x8xf32>
      %179 = vector.broadcast %178 : vector<1x8xf32> to vector<8x8xf32>
      %180 = arith.addf %176, %179 : vector<8x8xf32>
      %181 = arith.truncf %180 : vector<8x8xf32> to vector<8x8xbf16>
      %c0_113 = arith.constant 0 : index
      %c0_114 = arith.constant 0 : index
      %c0_115 = arith.constant 0 : index
      %182 = vector.load %arg14[%c0_113, %c0_114, %c0_115] : memref<4x8x8xbf16, #tpu.memory_space<vmem>>, vector<1x8x8xbf16>
      %183 = vector.shape_cast %182 : vector<1x8x8xbf16> to vector<8x8xbf16>
      %184 = vector.shape_cast %181 : vector<8x8xbf16> to vector<1x8x8xbf16>
      tpu.vector_store %arg14[%c0_113, %c0_114, %c0_115], %184 {strides = array<i32>} : memref<4x8x8xbf16, #tpu.memory_space<vmem>>, vector<1x8x8xbf16>,
      %c0_116 = arith.constant 0 : index
      %c0_117 = arith.constant 0 : index
      %c0_118 = arith.constant 0 : index
      %185 = vector.load %arg8[%c0_116, %c0_117, %c0_118] : memref<4x32x8xbf16, #tpu.memory_space<vmem>>, vector<1x32x8xbf16>
      %186 = vector.shape_cast %185 : vector<1x32x8xbf16> to vector<32x8xbf16>
      %cst_119 = arith.constant dense<0.000000e+00> : vector<8x8xf32>
      %187 = tpu.matmul %173, %186, %cst_119 {dimension_numbers = #tpu.dot_dimension_numbers<[1], [0], [0], [1], [0, 0, 1, 1], [], []>} : vector<8x32xbf16>, vector<32x8xbf16>, vector<8x8xf32> -> vector<8x8xf32>
      %c0_120 = arith.constant 0 : index
      %c0_121 = arith.constant 0 : index
      %c0_122 = arith.constant 0 : index
      %188 = vector.load %arg9[%c0_120, %c0_121, %c0_122] : memref<4x1x8xf32, #tpu.memory_space<vmem>>, vector<1x1x8xf32>
      %189 = vector.shape_cast %188 : vector<1x1x8xf32> to vector<1x8xf32>
      %190 = vector.broadcast %189 : vector<1x8xf32> to vector<8x8xf32>
      %191 = arith.addf %187, %190 : vector<8x8xf32>
      %192 = arith.truncf %191 : vector<8x8xf32> to vector<8x8xbf16>
      %c0_123 = arith.constant 0 : index
      %c0_124 = arith.constant 0 : index
      %c0_125 = arith.constant 0 : index
      %193 = vector.load %arg15[%c0_123, %c0_124, %c0_125] : memref<4x8x8xbf16, #tpu.memory_space<vmem>>, vector<1x8x8xbf16>
      %194 = vector.shape_cast %193 : vector<1x8x8xbf16> to vector<8x8xbf16>
      %195 = vector.shape_cast %192 : vector<8x8xbf16> to vector<1x8x8xbf16>
      tpu.vector_store %arg15[%c0_123, %c0_124, %c0_125], %195 {strides = array<i32>} : memref<4x8x8xbf16, #tpu.memory_space<vmem>>, vector<1x8x8xbf16>,
      %c1_126 = arith.constant 1 : index
      %c0_127 = arith.constant 0 : index
      %c0_128 = arith.constant 0 : index
      %196 = vector.load %arg6[%c1_126, %c0_127, %c0_128] : memref<4x32x8xbf16, #tpu.memory_space<vmem>>, vector<1x32x8xbf16>
      %197 = vector.shape_cast %196 : vector<1x32x8xbf16> to vector<32x8xbf16>
      %cst_129 = arith.constant dense<0.000000e+00> : vector<8x8xf32>
      %198 = tpu.matmul %173, %197, %cst_129 {dimension_numbers = #tpu.dot_dimension_numbers<[1], [0], [0], [1], [0, 0, 1, 1], [], []>} : vector<8x32xbf16>, vector<32x8xbf16>, vector<8x8xf32> -> vector<8x8xf32>
      %c1_130 = arith.constant 1 : index
      %c0_131 = arith.constant 0 : index
      %c0_132 = arith.constant 0 : index
      %199 = vector.load %arg7[%c1_130, %c0_131, %c0_132] : memref<4x1x8xf32, #tpu.memory_space<vmem>>, vector<1x1x8xf32>
      %200 = vector.shape_cast %199 : vector<1x1x8xf32> to vector<1x8xf32>
      %201 = vector.broadcast %200 : vector<1x8xf32> to vector<8x8xf32>
      %202 = arith.addf %198, %201 : vector<8x8xf32>
      %203 = arith.truncf %202 : vector<8x8xf32> to vector<8x8xbf16>
      %c1_133 = arith.constant 1 : index
      %c0_134 = arith.constant 0 : index
      %c0_135 = arith.constant 0 : index
      %204 = vector.load %arg14[%c1_133, %c0_134, %c0_135] : memref<4x8x8xbf16, #tpu.memory_space<vmem>>, vector<1x8x8xbf16>
      %205 = vector.shape_cast %204 : vector<1x8x8xbf16> to vector<8x8xbf16>
      %206 = vector.shape_cast %203 : vector<8x8xbf16> to vector<1x8x8xbf16>
      tpu.vector_store %arg14[%c1_133, %c0_134, %c0_135], %206 {strides = array<i32>} : memref<4x8x8xbf16, #tpu.memory_space<vmem>>, vector<1x8x8xbf16>,
      %c1_136 = arith.constant 1 : index
      %c0_137 = arith.constant 0 : index
      %c0_138 = arith.constant 0 : index
      %207 = vector.load %arg8[%c1_136, %c0_137, %c0_138] : memref<4x32x8xbf16, #tpu.memory_space<vmem>>, vector<1x32x8xbf16>
      %208 = vector.shape_cast %207 : vector<1x32x8xbf16> to vector<32x8xbf16>
      %cst_139 = arith.constant dense<0.000000e+00> : vector<8x8xf32>
      %209 = tpu.matmul %173, %208, %cst_139 {dimension_numbers = #tpu.dot_dimension_numbers<[1], [0], [0], [1], [0, 0, 1, 1], [], []>} : vector<8x32xbf16>, vector<32x8xbf16>, vector<8x8xf32> -> vector<8x8xf32>
      %c1_140 = arith.constant 1 : index
      %c0_141 = arith.constant 0 : index
      %c0_142 = arith.constant 0 : index
      %210 = vector.load %arg9[%c1_140, %c0_141, %c0_142] : memref<4x1x8xf32, #tpu.memory_space<vmem>>, vector<1x1x8xf32>
      %211 = vector.shape_cast %210 : vector<1x1x8xf32> to vector<1x8xf32>
      %212 = vector.broadcast %211 : vector<1x8xf32> to vector<8x8xf32>
      %213 = arith.addf %209, %212 : vector<8x8xf32>
      %214 = arith.truncf %213 : vector<8x8xf32> to vector<8x8xbf16>
      %c1_143 = arith.constant 1 : index
      %c0_144 = arith.constant 0 : index
      %c0_145 = arith.constant 0 : index
      %215 = vector.load %arg15[%c1_143, %c0_144, %c0_145] : memref<4x8x8xbf16, #tpu.memory_space<vmem>>, vector<1x8x8xbf16>
      %216 = vector.shape_cast %215 : vector<1x8x8xbf16> to vector<8x8xbf16>
      %217 = vector.shape_cast %214 : vector<8x8xbf16> to vector<1x8x8xbf16>
      tpu.vector_store %arg15[%c1_143, %c0_144, %c0_145], %217 {strides = array<i32>} : memref<4x8x8xbf16, #tpu.memory_space<vmem>>, vector<1x8x8xbf16>,
      %c2_146 = arith.constant 2 : index
      %c0_147 = arith.constant 0 : index
      %c0_148 = arith.constant 0 : index
      %218 = vector.load %arg6[%c2_146, %c0_147, %c0_148] : memref<4x32x8xbf16, #tpu.memory_space<vmem>>, vector<1x32x8xbf16>
      %219 = vector.shape_cast %218 : vector<1x32x8xbf16> to vector<32x8xbf16>
      %cst_149 = arith.constant dense<0.000000e+00> : vector<8x8xf32>
      %220 = tpu.matmul %173, %219, %cst_149 {dimension_numbers = #tpu.dot_dimension_numbers<[1], [0], [0], [1], [0, 0, 1, 1], [], []>} : vector<8x32xbf16>, vector<32x8xbf16>, vector<8x8xf32> -> vector<8x8xf32>
      %c2_150 = arith.constant 2 : index
      %c0_151 = arith.constant 0 : index
      %c0_152 = arith.constant 0 : index
      %221 = vector.load %arg7[%c2_150, %c0_151, %c0_152] : memref<4x1x8xf32, #tpu.memory_space<vmem>>, vector<1x1x8xf32>
      %222 = vector.shape_cast %221 : vector<1x1x8xf32> to vector<1x8xf32>
      %223 = vector.broadcast %222 : vector<1x8xf32> to vector<8x8xf32>
      %224 = arith.addf %220, %223 : vector<8x8xf32>
      %225 = arith.truncf %224 : vector<8x8xf32> to vector<8x8xbf16>
      %c2_153 = arith.constant 2 : index
      %c0_154 = arith.constant 0 : index
      %c0_155 = arith.constant 0 : index
      %226 = vector.load %arg14[%c2_153, %c0_154, %c0_155] : memref<4x8x8xbf16, #tpu.memory_space<vmem>>, vector<1x8x8xbf16>
      %227 = vector.shape_cast %226 : vector<1x8x8xbf16> to vector<8x8xbf16>
      %228 = vector.shape_cast %225 : vector<8x8xbf16> to vector<1x8x8xbf16>
      tpu.vector_store %arg14[%c2_153, %c0_154, %c0_155], %228 {strides = array<i32>} : memref<4x8x8xbf16, #tpu.memory_space<vmem>>, vector<1x8x8xbf16>,
      %c2_156 = arith.constant 2 : index
      %c0_157 = arith.constant 0 : index
      %c0_158 = arith.constant 0 : index
      %229 = vector.load %arg8[%c2_156, %c0_157, %c0_158] : memref<4x32x8xbf16, #tpu.memory_space<vmem>>, vector<1x32x8xbf16>
      %230 = vector.shape_cast %229 : vector<1x32x8xbf16> to vector<32x8xbf16>
      %cst_159 = arith.constant dense<0.000000e+00> : vector<8x8xf32>
      %231 = tpu.matmul %173, %230, %cst_159 {dimension_numbers = #tpu.dot_dimension_numbers<[1], [0], [0], [1], [0, 0, 1, 1], [], []>} : vector<8x32xbf16>, vector<32x8xbf16>, vector<8x8xf32> -> vector<8x8xf32>
      %c2_160 = arith.constant 2 : index
      %c0_161 = arith.constant 0 : index
      %c0_162 = arith.constant 0 : index
      %232 = vector.load %arg9[%c2_160, %c0_161, %c0_162] : memref<4x1x8xf32, #tpu.memory_space<vmem>>, vector<1x1x8xf32>
      %233 = vector.shape_cast %232 : vector<1x1x8xf32> to vector<1x8xf32>
      %234 = vector.broadcast %233 : vector<1x8xf32> to vector<8x8xf32>
      %235 = arith.addf %231, %234 : vector<8x8xf32>
      %236 = arith.truncf %235 : vector<8x8xf32> to vector<8x8xbf16>
      %c2_163 = arith.constant 2 : index
      %c0_164 = arith.constant 0 : index
      %c0_165 = arith.constant 0 : index
      %237 = vector.load %arg15[%c2_163, %c0_164, %c0_165] : memref<4x8x8xbf16, #tpu.memory_space<vmem>>, vector<1x8x8xbf16>
      %238 = vector.shape_cast %237 : vector<1x8x8xbf16> to vector<8x8xbf16>
      %239 = vector.shape_cast %236 : vector<8x8xbf16> to vector<1x8x8xbf16>
      tpu.vector_store %arg15[%c2_163, %c0_164, %c0_165], %239 {strides = array<i32>} : memref<4x8x8xbf16, #tpu.memory_space<vmem>>, vector<1x8x8xbf16>,
      %c3_166 = arith.constant 3 : index
      %c0_167 = arith.constant 0 : index
      %c0_168 = arith.constant 0 : index
      %240 = vector.load %arg6[%c3_166, %c0_167, %c0_168] : memref<4x32x8xbf16, #tpu.memory_space<vmem>>, vector<1x32x8xbf16>
      %241 = vector.shape_cast %240 : vector<1x32x8xbf16> to vector<32x8xbf16>
      %cst_169 = arith.constant dense<0.000000e+00> : vector<8x8xf32>
      %242 = tpu.matmul %173, %241, %cst_169 {dimension_numbers = #tpu.dot_dimension_numbers<[1], [0], [0], [1], [0, 0, 1, 1], [], []>} : vector<8x32xbf16>, vector<32x8xbf16>, vector<8x8xf32> -> vector<8x8xf32>
      %c3_170 = arith.constant 3 : index
      %c0_171 = arith.constant 0 : index
      %c0_172 = arith.constant 0 : index
      %243 = vector.load %arg7[%c3_170, %c0_171, %c0_172] : memref<4x1x8xf32, #tpu.memory_space<vmem>>, vector<1x1x8xf32>
      %244 = vector.shape_cast %243 : vector<1x1x8xf32> to vector<1x8xf32>
      %245 = vector.broadcast %244 : vector<1x8xf32> to vector<8x8xf32>
      %246 = arith.addf %242, %245 : vector<8x8xf32>
      %247 = arith.truncf %246 : vector<8x8xf32> to vector<8x8xbf16>
      %c3_173 = arith.constant 3 : index
      %c0_174 = arith.constant 0 : index
      %c0_175 = arith.constant 0 : index
      %248 = vector.load %arg14[%c3_173, %c0_174, %c0_175] : memref<4x8x8xbf16, #tpu.memory_space<vmem>>, vector<1x8x8xbf16>
      %249 = vector.shape_cast %248 : vector<1x8x8xbf16> to vector<8x8xbf16>
      %250 = vector.shape_cast %247 : vector<8x8xbf16> to vector<1x8x8xbf16>
      tpu.vector_store %arg14[%c3_173, %c0_174, %c0_175], %250 {strides = array<i32>} : memref<4x8x8xbf16, #tpu.memory_space<vmem>>, vector<1x8x8xbf16>,
      %c3_176 = arith.constant 3 : index
      %c0_177 = arith.constant 0 : index
      %c0_178 = arith.constant 0 : index
      %251 = vector.load %arg8[%c3_176, %c0_177, %c0_178] : memref<4x32x8xbf16, #tpu.memory_space<vmem>>, vector<1x32x8xbf16>
      %252 = vector.shape_cast %251 : vector<1x32x8xbf16> to vector<32x8xbf16>
      %cst_179 = arith.constant dense<0.000000e+00> : vector<8x8xf32>
      %253 = tpu.matmul %173, %252, %cst_179 {dimension_numbers = #tpu.dot_dimension_numbers<[1], [0], [0], [1], [0, 0, 1, 1], [], []>} : vector<8x32xbf16>, vector<32x8xbf16>, vector<8x8xf32> -> vector<8x8xf32>
      %c3_180 = arith.constant 3 : index
      %c0_181 = arith.constant 0 : index
      %c0_182 = arith.constant 0 : index
      %254 = vector.load %arg9[%c3_180, %c0_181, %c0_182] : memref<4x1x8xf32, #tpu.memory_space<vmem>>, vector<1x1x8xf32>
      %255 = vector.shape_cast %254 : vector<1x1x8xf32> to vector<1x8xf32>
      %256 = vector.broadcast %255 : vector<1x8xf32> to vector<8x8xf32>
      %257 = arith.addf %253, %256 : vector<8x8xf32>
      %258 = arith.truncf %257 : vector<8x8xf32> to vector<8x8xbf16>
      %c3_183 = arith.constant 3 : index
      %c0_184 = arith.constant 0 : index
      %c0_185 = arith.constant 0 : index
      %259 = vector.load %arg15[%c3_183, %c0_184, %c0_185] : memref<4x8x8xbf16, #tpu.memory_space<vmem>>, vector<1x8x8xbf16>
      %260 = vector.shape_cast %259 : vector<1x8x8xbf16> to vector<8x8xbf16>
      %261 = vector.shape_cast %258 : vector<8x8xbf16> to vector<1x8x8xbf16>
      tpu.vector_store %arg15[%c3_183, %c0_184, %c0_185], %261 {strides = array<i32>} : memref<4x8x8xbf16, #tpu.memory_space<vmem>>, vector<1x8x8xbf16>,
    } else {
    }
    %c8_i32 = arith.constant 8 : i32
    %3 = arith.muli %arg1, %c8_i32 : i32
    %4 = tpu.assume_multiple %3, 8 : i32
    %c0 = arith.constant 0 : index
    %5 = arith.index_cast %4 : i32 to index
    %c0_1 = arith.constant 0 : index
    %6 = vector.load %arg2[%c0, %5, %c0_1] : memref<1x8x32xbf16, #tpu.memory_space<vmem>>, vector<1x8x32xbf16>
    %7 = vector.shape_cast %6 : vector<1x8x32xbf16> to vector<8x32xbf16>
    %c0_2 = arith.constant 0 : index
    %c0_3 = arith.constant 0 : index
    %c0_4 = arith.constant 0 : index
    %8 = vector.load %arg3[%c0_2, %c0_3, %c0_4] : memref<1x1x8xf32, #tpu.memory_space<vmem>>, vector<1x1x8xf32>
    %9 = vector.shape_cast %8 : vector<1x1x8xf32> to vector<1x8xf32>
    %cst = arith.constant 0.000000e+00 : f32
    %10 = vector.broadcast %cst : f32 to vector<1x8xf32>
    %11 = arith.cmpf oeq, %9, %10 : vector<1x8xf32>
    %cst_5 = arith.constant 0.000000e+00 : f32
    %12 = vector.broadcast %cst_5 : f32 to vector<8x32xf32>
    %cst_6 = arith.constant 0.000000e+00 : f32
    %13 = vector.broadcast %cst_6 : f32 to vector<8x8xf32>
    %c0_7 = arith.constant 0 : index
    %c0_8 = arith.constant 0 : index
    %c0_9 = arith.constant 0 : index
    %14 = vector.load %arg4[%c0_7, %c0_8, %c0_9] : memref<4x32x8xbf16, #tpu.memory_space<vmem>>, vector<1x32x8xbf16>
    %15 = vector.shape_cast %14 : vector<1x32x8xbf16> to vector<32x8xbf16>
    %cst_10 = arith.constant dense<0.000000e+00> : vector<8x8xf32>
    %16 = tpu.matmul %7, %15, %cst_10 {dimension_numbers = #tpu.dot_dimension_numbers<[1], [0], [0], [1], [0, 0, 1, 1], [], []>} : vector<8x32xbf16>, vector<32x8xbf16>, vector<8x8xf32> -> vector<8x8xf32>
    %c0_11 = arith.constant 0 : index
    %c0_12 = arith.constant 0 : index
    %c0_13 = arith.constant 0 : index
    %17 = vector.load %arg5[%c0_11, %c0_12, %c0_13] : memref<4x1x8xf32, #tpu.memory_space<vmem>>, vector<1x1x8xf32>
    %18 = vector.shape_cast %17 : vector<1x1x8xf32> to vector<1x8xf32>
    %19 = vector.broadcast %18 : vector<1x8xf32> to vector<8x8xf32>
    %20 = arith.addf %16, %19 : vector<8x8xf32>
    %21 = arith.truncf %20 : vector<8x8xf32> to vector<8x8xbf16>
    %c0_14 = arith.constant 0 : index
    %c0_15 = arith.constant 0 : index
    %c0_16 = arith.constant 0 : index
    %22 = vector.load %arg14[%c0_14, %c0_15, %c0_16] : memref<4x8x8xbf16, #tpu.memory_space<vmem>>, vector<1x8x8xbf16>
    %23 = vector.shape_cast %22 : vector<1x8x8xbf16> to vector<8x8xbf16>
    %c0_17 = arith.constant 0 : index
    %c0_18 = arith.constant 0 : index
    %c0_19 = arith.constant 0 : index
    %24 = vector.load %arg15[%c0_17, %c0_18, %c0_19] : memref<4x8x8xbf16, #tpu.memory_space<vmem>>, vector<1x8x8xbf16>
    %25 = vector.shape_cast %24 : vector<1x8x8xbf16> to vector<8x8xbf16>
    "tpu.trace_start"() <{level = 10 : i32, message = "qd,kd->qk"}> : () -> ()
    %cst_20 = arith.constant dense<0.000000e+00> : vector<8x8xf32>
    %26 = tpu.matmul %21, %23, %cst_20 {dimension_numbers = #tpu.dot_dimension_numbers<[1], [1], [0], [0], [0, 0, 1, 0], [], []>} : vector<8x8xbf16>, vector<8x8xbf16>, vector<8x8xf32> -> vector<8x8xf32>
    %cst_21 = arith.constant 0xFF800000 : f32
    "tpu.trace_stop"() : () -> ()
    %27 = vector.shape_cast %11 : vector<1x8xi1> to vector<1x8xi1>
    %28 = vector.broadcast %27 : vector<1x8xi1> to vector<8x8xi1>
    %29 = vector.broadcast %cst_21 : f32 to vector<8x8xf32>
    %30 = arith.select %28, %29, %26 : vector<8x8xi1>, vector<8x8xf32>
    %cst_22 = arith.constant dense<0xFF800000> : vector<8xf32>
    %31 = vector.multi_reduction <maximumf>, %30, %cst_22 [1] : vector<8x8xf32> to vector<8xf32>
    %32 = vector.shape_cast %31 : vector<8xf32> to vector<8x1xf32>
    %33 = vector.broadcast %32 : vector<8x1xf32> to vector<8x8xf32>
    %34 = arith.subf %30, %33 : vector<8x8xf32>
    %35 = math.exp %34 : vector<8x8xf32>
    %cst_23 = arith.constant dense<0.000000e+00> : vector<8xf32>
    %36 = vector.multi_reduction <add>, %35, %cst_23 [1] : vector<8x8xf32> to vector<8xf32>
    %37 = vector.shape_cast %36 : vector<8xf32> to vector<8x1xf32>
    %38 = tpu.reciprocal %37 {approx = true} : vector<8x1xf32> -> vector<8x1xf32>
    %39 = vector.broadcast %38 : vector<8x1xf32> to vector<8x8xf32>
    %40 = arith.mulf %35, %39 : vector<8x8xf32>
    %41 = arith.addf %13, %40 : vector<8x8xf32>
    %42 = arith.truncf %40 : vector<8x8xf32> to vector<8x8xbf16>
    %cst_24 = arith.constant dense<0.000000e+00> : vector<8x8xf32>
    %43 = tpu.matmul %42, %25, %cst_24 {dimension_numbers = #tpu.dot_dimension_numbers<[1], [0], [0], [1], [0, 0, 1, 1], [], []>} : vector<8x8xbf16>, vector<8x8xbf16>, vector<8x8xf32> -> vector<8x8xf32>
    %44 = arith.truncf %43 : vector<8x8xf32> to vector<8x8xbf16>
    %c0_25 = arith.constant 0 : index
    %c0_26 = arith.constant 0 : index
    %c0_27 = arith.constant 0 : index
    %45 = vector.load %arg10[%c0_25, %c0_26, %c0_27] : memref<4x8x32xbf16, #tpu.memory_space<vmem>>, vector<1x8x32xbf16>
    %46 = vector.shape_cast %45 : vector<1x8x32xbf16> to vector<8x32xbf16>
    %cst_28 = arith.constant dense<0.000000e+00> : vector<8x32xf32>
    %47 = tpu.matmul %44, %46, %cst_28 {dimension_numbers = #tpu.dot_dimension_numbers<[1], [0], [0], [1], [0, 0, 1, 1], [], []>} : vector<8x8xbf16>, vector<8x32xbf16>, vector<8x32xf32> -> vector<8x32xf32>
    %48 = arith.addf %12, %47 : vector<8x32xf32>
    %c1 = arith.constant 1 : index
    %c0_29 = arith.constant 0 : index
    %c0_30 = arith.constant 0 : index
    %49 = vector.load %arg4[%c1, %c0_29, %c0_30] : memref<4x32x8xbf16, #tpu.memory_space<vmem>>, vector<1x32x8xbf16>
    %50 = vector.shape_cast %49 : vector<1x32x8xbf16> to vector<32x8xbf16>
    %cst_31 = arith.constant dense<0.000000e+00> : vector<8x8xf32>
    %51 = tpu.matmul %7, %50, %cst_31 {dimension_numbers = #tpu.dot_dimension_numbers<[1], [0], [0], [1], [0, 0, 1, 1], [], []>} : vector<8x32xbf16>, vector<32x8xbf16>, vector<8x8xf32> -> vector<8x8xf32>
    %c1_32 = arith.constant 1 : index
    %c0_33 = arith.constant 0 : index
    %c0_34 = arith.constant 0 : index
    %52 = vector.load %arg5[%c1_32, %c0_33, %c0_34] : memref<4x1x8xf32, #tpu.memory_space<vmem>>, vector<1x1x8xf32>
    %53 = vector.shape_cast %52 : vector<1x1x8xf32> to vector<1x8xf32>
    %54 = vector.broadcast %53 : vector<1x8xf32> to vector<8x8xf32>
    %55 = arith.addf %51, %54 : vector<8x8xf32>
    %56 = arith.truncf %55 : vector<8x8xf32> to vector<8x8xbf16>
    %c1_35 = arith.constant 1 : index
    %c0_36 = arith.constant 0 : index
    %c0_37 = arith.constant 0 : index
    %57 = vector.load %arg14[%c1_35, %c0_36, %c0_37] : memref<4x8x8xbf16, #tpu.memory_space<vmem>>, vector<1x8x8xbf16>
    %58 = vector.shape_cast %57 : vector<1x8x8xbf16> to vector<8x8xbf16>
    %c1_38 = arith.constant 1 : index
    %c0_39 = arith.constant 0 : index
    %c0_40 = arith.constant 0 : index
    %59 = vector.load %arg15[%c1_38, %c0_39, %c0_40] : memref<4x8x8xbf16, #tpu.memory_space<vmem>>, vector<1x8x8xbf16>
    %60 = vector.shape_cast %59 : vector<1x8x8xbf16> to vector<8x8xbf16>
    "tpu.trace_start"() <{level = 10 : i32, message = "qd,kd->qk"}> : () -> ()
    %cst_41 = arith.constant dense<0.000000e+00> : vector<8x8xf32>
    %61 = tpu.matmul %56, %58, %cst_41 {dimension_numbers = #tpu.dot_dimension_numbers<[1], [1], [0], [0], [0, 0, 1, 0], [], []>} : vector<8x8xbf16>, vector<8x8xbf16>, vector<8x8xf32> -> vector<8x8xf32>
    %cst_42 = arith.constant 0xFF800000 : f32
    "tpu.trace_stop"() : () -> ()
    %62 = vector.shape_cast %11 : vector<1x8xi1> to vector<1x8xi1>
    %63 = vector.broadcast %62 : vector<1x8xi1> to vector<8x8xi1>
    %64 = vector.broadcast %cst_42 : f32 to vector<8x8xf32>
    %65 = arith.select %63, %64, %61 : vector<8x8xi1>, vector<8x8xf32>
    %cst_43 = arith.constant dense<0xFF800000> : vector<8xf32>
    %66 = vector.multi_reduction <maximumf>, %65, %cst_43 [1] : vector<8x8xf32> to vector<8xf32>
    %67 = vector.shape_cast %66 : vector<8xf32> to vector<8x1xf32>
    %68 = vector.broadcast %67 : vector<8x1xf32> to vector<8x8xf32>
    %69 = arith.subf %65, %68 : vector<8x8xf32>
    %70 = math.exp %69 : vector<8x8xf32>
    %cst_44 = arith.constant dense<0.000000e+00> : vector<8xf32>
    %71 = vector.multi_reduction <add>, %70, %cst_44 [1] : vector<8x8xf32> to vector<8xf32>
    %72 = vector.shape_cast %71 : vector<8xf32> to vector<8x1xf32>
    %73 = tpu.reciprocal %72 {approx = true} : vector<8x1xf32> -> vector<8x1xf32>
    %74 = vector.broadcast %73 : vector<8x1xf32> to vector<8x8xf32>
    %75 = arith.mulf %70, %74 : vector<8x8xf32>
    %76 = arith.addf %41, %75 : vector<8x8xf32>
    %77 = arith.truncf %75 : vector<8x8xf32> to vector<8x8xbf16>
    %cst_45 = arith.constant dense<0.000000e+00> : vector<8x8xf32>
    %78 = tpu.matmul %77, %60, %cst_45 {dimension_numbers = #tpu.dot_dimension_numbers<[1], [0], [0], [1], [0, 0, 1, 1], [], []>} : vector<8x8xbf16>, vector<8x8xbf16>, vector<8x8xf32> -> vector<8x8xf32>
    %79 = arith.truncf %78 : vector<8x8xf32> to vector<8x8xbf16>
    %c1_46 = arith.constant 1 : index
    %c0_47 = arith.constant 0 : index
    %c0_48 = arith.constant 0 : index
    %80 = vector.load %arg10[%c1_46, %c0_47, %c0_48] : memref<4x8x32xbf16, #tpu.memory_space<vmem>>, vector<1x8x32xbf16>
    %81 = vector.shape_cast %80 : vector<1x8x32xbf16> to vector<8x32xbf16>
    %cst_49 = arith.constant dense<0.000000e+00> : vector<8x32xf32>
    %82 = tpu.matmul %79, %81, %cst_49 {dimension_numbers = #tpu.dot_dimension_numbers<[1], [0], [0], [1], [0, 0, 1, 1], [], []>} : vector<8x8xbf16>, vector<8x32xbf16>, vector<8x32xf32> -> vector<8x32xf32>
    %83 = arith.addf %48, %82 : vector<8x32xf32>
    %c2 = arith.constant 2 : index
    %c0_50 = arith.constant 0 : index
    %c0_51 = arith.constant 0 : index
    %84 = vector.load %arg4[%c2, %c0_50, %c0_51] : memref<4x32x8xbf16, #tpu.memory_space<vmem>>, vector<1x32x8xbf16>
    %85 = vector.shape_cast %84 : vector<1x32x8xbf16> to vector<32x8xbf16>
    %cst_52 = arith.constant dense<0.000000e+00> : vector<8x8xf32>
    %86 = tpu.matmul %7, %85, %cst_52 {dimension_numbers = #tpu.dot_dimension_numbers<[1], [0], [0], [1], [0, 0, 1, 1], [], []>} : vector<8x32xbf16>, vector<32x8xbf16>, vector<8x8xf32> -> vector<8x8xf32>
    %c2_53 = arith.constant 2 : index
    %c0_54 = arith.constant 0 : index
    %c0_55 = arith.constant 0 : index
    %87 = vector.load %arg5[%c2_53, %c0_54, %c0_55] : memref<4x1x8xf32, #tpu.memory_space<vmem>>, vector<1x1x8xf32>
    %88 = vector.shape_cast %87 : vector<1x1x8xf32> to vector<1x8xf32>
    %89 = vector.broadcast %88 : vector<1x8xf32> to vector<8x8xf32>
    %90 = arith.addf %86, %89 : vector<8x8xf32>
    %91 = arith.truncf %90 : vector<8x8xf32> to vector<8x8xbf16>
    %c2_56 = arith.constant 2 : index
    %c0_57 = arith.constant 0 : index
    %c0_58 = arith.constant 0 : index
    %92 = vector.load %arg14[%c2_56, %c0_57, %c0_58] : memref<4x8x8xbf16, #tpu.memory_space<vmem>>, vector<1x8x8xbf16>
    %93 = vector.shape_cast %92 : vector<1x8x8xbf16> to vector<8x8xbf16>
    %c2_59 = arith.constant 2 : index
    %c0_60 = arith.constant 0 : index
    %c0_61 = arith.constant 0 : index
    %94 = vector.load %arg15[%c2_59, %c0_60, %c0_61] : memref<4x8x8xbf16, #tpu.memory_space<vmem>>, vector<1x8x8xbf16>
    %95 = vector.shape_cast %94 : vector<1x8x8xbf16> to vector<8x8xbf16>
    "tpu.trace_start"() <{level = 10 : i32, message = "qd,kd->qk"}> : () -> ()
    %cst_62 = arith.constant dense<0.000000e+00> : vector<8x8xf32>
    %96 = tpu.matmul %91, %93, %cst_62 {dimension_numbers = #tpu.dot_dimension_numbers<[1], [1], [0], [0], [0, 0, 1, 0], [], []>} : vector<8x8xbf16>, vector<8x8xbf16>, vector<8x8xf32> -> vector<8x8xf32>
    %cst_63 = arith.constant 0xFF800000 : f32
    "tpu.trace_stop"() : () -> ()
    %97 = vector.shape_cast %11 : vector<1x8xi1> to vector<1x8xi1>
    %98 = vector.broadcast %97 : vector<1x8xi1> to vector<8x8xi1>
    %99 = vector.broadcast %cst_63 : f32 to vector<8x8xf32>
    %100 = arith.select %98, %99, %96 : vector<8x8xi1>, vector<8x8xf32>
    %cst_64 = arith.constant dense<0xFF800000> : vector<8xf32>
    %101 = vector.multi_reduction <maximumf>, %100, %cst_64 [1] : vector<8x8xf32> to vector<8xf32>
    %102 = vector.shape_cast %101 : vector<8xf32> to vector<8x1xf32>
    %103 = vector.broadcast %102 : vector<8x1xf32> to vector<8x8xf32>
    %104 = arith.subf %100, %103 : vector<8x8xf32>
    %105 = math.exp %104 : vector<8x8xf32>
    %cst_65 = arith.constant dense<0.000000e+00> : vector<8xf32>
    %106 = vector.multi_reduction <add>, %105, %cst_65 [1] : vector<8x8xf32> to vector<8xf32>
    %107 = vector.shape_cast %106 : vector<8xf32> to vector<8x1xf32>
    %108 = tpu.reciprocal %107 {approx = true} : vector<8x1xf32> -> vector<8x1xf32>
    %109 = vector.broadcast %108 : vector<8x1xf32> to vector<8x8xf32>
    %110 = arith.mulf %105, %109 : vector<8x8xf32>
    %111 = arith.addf %76, %110 : vector<8x8xf32>
    %112 = arith.truncf %110 : vector<8x8xf32> to vector<8x8xbf16>
    %cst_66 = arith.constant dense<0.000000e+00> : vector<8x8xf32>
    %113 = tpu.matmul %112, %95, %cst_66 {dimension_numbers = #tpu.dot_dimension_numbers<[1], [0], [0], [1], [0, 0, 1, 1], [], []>} : vector<8x8xbf16>, vector<8x8xbf16>, vector<8x8xf32> -> vector<8x8xf32>
    %114 = arith.truncf %113 : vector<8x8xf32> to vector<8x8xbf16>
    %c2_67 = arith.constant 2 : index
    %c0_68 = arith.constant 0 : index
    %c0_69 = arith.constant 0 : index
    %115 = vector.load %arg10[%c2_67, %c0_68, %c0_69] : memref<4x8x32xbf16, #tpu.memory_space<vmem>>, vector<1x8x32xbf16>
    %116 = vector.shape_cast %115 : vector<1x8x32xbf16> to vector<8x32xbf16>
    %cst_70 = arith.constant dense<0.000000e+00> : vector<8x32xf32>
    %117 = tpu.matmul %114, %116, %cst_70 {dimension_numbers = #tpu.dot_dimension_numbers<[1], [0], [0], [1], [0, 0, 1, 1], [], []>} : vector<8x8xbf16>, vector<8x32xbf16>, vector<8x32xf32> -> vector<8x32xf32>
    %118 = arith.addf %83, %117 : vector<8x32xf32>
    %c3 = arith.constant 3 : index
    %c0_71 = arith.constant 0 : index
    %c0_72 = arith.constant 0 : index
    %119 = vector.load %arg4[%c3, %c0_71, %c0_72] : memref<4x32x8xbf16, #tpu.memory_space<vmem>>, vector<1x32x8xbf16>
    %120 = vector.shape_cast %119 : vector<1x32x8xbf16> to vector<32x8xbf16>
    %cst_73 = arith.constant dense<0.000000e+00> : vector<8x8xf32>
    %121 = tpu.matmul %7, %120, %cst_73 {dimension_numbers = #tpu.dot_dimension_numbers<[1], [0], [0], [1], [0, 0, 1, 1], [], []>} : vector<8x32xbf16>, vector<32x8xbf16>, vector<8x8xf32> -> vector<8x8xf32>
    %c3_74 = arith.constant 3 : index
    %c0_75 = arith.constant 0 : index
    %c0_76 = arith.constant 0 : index
    %122 = vector.load %arg5[%c3_74, %c0_75, %c0_76] : memref<4x1x8xf32, #tpu.memory_space<vmem>>, vector<1x1x8xf32>
    %123 = vector.shape_cast %122 : vector<1x1x8xf32> to vector<1x8xf32>
    %124 = vector.broadcast %123 : vector<1x8xf32> to vector<8x8xf32>
    %125 = arith.addf %121, %124 : vector<8x8xf32>
    %126 = arith.truncf %125 : vector<8x8xf32> to vector<8x8xbf16>
    %c3_77 = arith.constant 3 : index
    %c0_78 = arith.constant 0 : index
    %c0_79 = arith.constant 0 : index
    %127 = vector.load %arg14[%c3_77, %c0_78, %c0_79] : memref<4x8x8xbf16, #tpu.memory_space<vmem>>, vector<1x8x8xbf16>
    %128 = vector.shape_cast %127 : vector<1x8x8xbf16> to vector<8x8xbf16>
    %c3_80 = arith.constant 3 : index
    %c0_81 = arith.constant 0 : index
    %c0_82 = arith.constant 0 : index
    %129 = vector.load %arg15[%c3_80, %c0_81, %c0_82] : memref<4x8x8xbf16, #tpu.memory_space<vmem>>, vector<1x8x8xbf16>
    %130 = vector.shape_cast %129 : vector<1x8x8xbf16> to vector<8x8xbf16>
    "tpu.trace_start"() <{level = 10 : i32, message = "qd,kd->qk"}> : () -> ()
    %cst_83 = arith.constant dense<0.000000e+00> : vector<8x8xf32>
    %131 = tpu.matmul %126, %128, %cst_83 {dimension_numbers = #tpu.dot_dimension_numbers<[1], [1], [0], [0], [0, 0, 1, 0], [], []>} : vector<8x8xbf16>, vector<8x8xbf16>, vector<8x8xf32> -> vector<8x8xf32>
    %cst_84 = arith.constant 0xFF800000 : f32
    "tpu.trace_stop"() : () -> ()
    %132 = vector.shape_cast %11 : vector<1x8xi1> to vector<1x8xi1>
    %133 = vector.broadcast %132 : vector<1x8xi1> to vector<8x8xi1>
    %134 = vector.broadcast %cst_84 : f32 to vector<8x8xf32>
    %135 = arith.select %133, %134, %131 : vector<8x8xi1>, vector<8x8xf32>
    %cst_85 = arith.constant dense<0xFF800000> : vector<8xf32>
    %136 = vector.multi_reduction <maximumf>, %135, %cst_85 [1] : vector<8x8xf32> to vector<8xf32>
    %137 = vector.shape_cast %136 : vector<8xf32> to vector<8x1xf32>
    %138 = vector.broadcast %137 : vector<8x1xf32> to vector<8x8xf32>
    %139 = arith.subf %135, %138 : vector<8x8xf32>
    %140 = math.exp %139 : vector<8x8xf32>
    %cst_86 = arith.constant dense<0.000000e+00> : vector<8xf32>
    %141 = vector.multi_reduction <add>, %140, %cst_86 [1] : vector<8x8xf32> to vector<8xf32>
    %142 = vector.shape_cast %141 : vector<8xf32> to vector<8x1xf32>
    %143 = tpu.reciprocal %142 {approx = true} : vector<8x1xf32> -> vector<8x1xf32>
    %144 = vector.broadcast %143 : vector<8x1xf32> to vector<8x8xf32>
    %145 = arith.mulf %140, %144 : vector<8x8xf32>
    %146 = arith.addf %111, %145 : vector<8x8xf32>
    %147 = arith.truncf %145 : vector<8x8xf32> to vector<8x8xbf16>
    %cst_87 = arith.constant dense<0.000000e+00> : vector<8x8xf32>
    %148 = tpu.matmul %147, %130, %cst_87 {dimension_numbers = #tpu.dot_dimension_numbers<[1], [0], [0], [1], [0, 0, 1, 1], [], []>} : vector<8x8xbf16>, vector<8x8xbf16>, vector<8x8xf32> -> vector<8x8xf32>
    %149 = arith.truncf %148 : vector<8x8xf32> to vector<8x8xbf16>
    %c3_88 = arith.constant 3 : index
    %c0_89 = arith.constant 0 : index
    %c0_90 = arith.constant 0 : index
    %150 = vector.load %arg10[%c3_88, %c0_89, %c0_90] : memref<4x8x32xbf16, #tpu.memory_space<vmem>>, vector<1x8x32xbf16>
    %151 = vector.shape_cast %150 : vector<1x8x32xbf16> to vector<8x32xbf16>
    %cst_91 = arith.constant dense<0.000000e+00> : vector<8x32xf32>
    %152 = tpu.matmul %149, %151, %cst_91 {dimension_numbers = #tpu.dot_dimension_numbers<[1], [0], [0], [1], [0, 0, 1, 1], [], []>} : vector<8x8xbf16>, vector<8x32xbf16>, vector<8x32xf32> -> vector<8x32xf32>
    %153 = arith.addf %118, %152 : vector<8x32xf32>
    %c0_92 = arith.constant 0 : index
    %c0_93 = arith.constant 0 : index
    %154 = vector.load %arg11[%c0_92, %c0_93] : memref<1x32xf32, #tpu.memory_space<vmem>>, vector<1x32xf32>
    %155 = vector.broadcast %154 : vector<1x32xf32> to vector<8x32xf32>
    %156 = arith.addf %153, %155 : vector<8x32xf32>
    %c0_94 = arith.constant 0 : index
    %c0_95 = arith.constant 0 : index
    %c0_96 = arith.constant 0 : index
    %157 = vector.load %arg12[%c0_94, %c0_95, %c0_96] : memref<1x8x32xf32, #tpu.memory_space<vmem>>, vector<1x8x32xf32>
    %158 = vector.shape_cast %157 : vector<1x8x32xf32> to vector<8x32xf32>
    %159 = vector.shape_cast %156 : vector<8x32xf32> to vector<1x8x32xf32>
    tpu.vector_store %arg12[%c0_94, %c0_95, %c0_96], %159 {strides = array<i32>} : memref<1x8x32xf32, #tpu.memory_space<vmem>>, vector<1x8x32xf32>,
    %160 = tpu.iota {dimensions = array<i32: 1>} : vector<8x8xi32>
    %cst_97 = arith.constant dense<0xFF800000> : vector<8xf32>
    %161 = vector.multi_reduction <maximumf>, %146, %cst_97 [1] : vector<8x8xf32> to vector<8xf32>
    %162 = vector.shape_cast %161 : vector<8xf32> to vector<8x1xf32>
    %163 = vector.broadcast %162 : vector<8x1xf32> to vector<8x8xf32>
    %164 = arith.cmpf oeq, %146, %163 : vector<8x8xf32>
    %c8_i32_98 = arith.constant 8 : i32
    %165 = vector.broadcast %c8_i32_98 : i32 to vector<8x8xi32>
    %166 = arith.select %164, %160, %165 : vector<8x8xi1>, vector<8x8xi32>
    %cst_99 = arith.constant dense<2147483647> : vector<8xi32>
    %167 = vector.multi_reduction <minsi>, %166, %cst_99 [1] : vector<8x8xi32> to vector<8xi32>
    %168 = vector.shape_cast %167 : vector<8xi32> to vector<1x8xi32>
    %c0_100 = arith.constant 0 : index
    %c0_101 = arith.constant 0 : index
    %c0_102 = arith.constant 0 : index
    %169 = vector.load %arg13[%c0_100, %c0_101, %c0_102] : memref<1x1x8xi32, #tpu.memory_space<vmem>>, vector<1x1x8xi32>
    %170 = vector.shape_cast %169 : vector<1x1x8xi32> to vector<1x8xi32>
    %171 = vector.shape_cast %168 : vector<1x8xi32> to vector<1x1x8xi32>
    tpu.vector_store %arg13[%c0_100, %c0_101, %c0_102], %171 {strides = array<i32>} : memref<1x1x8xi32, #tpu.memory_space<vmem>>, vector<1x1x8xi32>,
    return
  }
  func.func @transform_0(%arg0: i32, %arg1: i32) -> (i32, i32, i32) {
    %c0_i32 = arith.constant 0 : i32
    %c0_i32_0 = arith.constant 0 : i32
    %c0_i32_1 = arith.constant 0 : i32
    return %arg0, %c0_i32, %c0_i32_0 : i32, i32, i32
  }
  func.func @transform_1(%arg0: i32, %arg1: i32) -> (i32, i32, i32) {
    %c0_i32 = arith.constant 0 : i32
    %c0_i32_0 = arith.constant 0 : i32
    %c0_i32_1 = arith.constant 0 : i32
    return %arg0, %c0_i32, %c0_i32_0 : i32, i32, i32
  }
  func.func @transform_2(%arg0: i32, %arg1: i32) -> (i32, i32, i32) {
    %c0_i32 = arith.constant 0 : i32
    %c0_i32_0 = arith.constant 0 : i32
    %c0_i32_1 = arith.constant 0 : i32
    %c0_i32_2 = arith.constant 0 : i32
    return %c0_i32, %c0_i32_0, %c0_i32_1 : i32, i32, i32
  }
  func.func @transform_3(%arg0: i32, %arg1: i32) -> (i32, i32, i32) {
    %c0_i32 = arith.constant 0 : i32
    %c0_i32_0 = arith.constant 0 : i32
    %c0_i32_1 = arith.constant 0 : i32
    %c0_i32_2 = arith.constant 0 : i32
    return %c0_i32, %c0_i32_0, %c0_i32_1 : i32, i32, i32
  }
  func.func @transform_4(%arg0: i32, %arg1: i32) -> (i32, i32, i32) {
    %c0_i32 = arith.constant 0 : i32
    %c0_i32_0 = arith.constant 0 : i32
    %c0_i32_1 = arith.constant 0 : i32
    %c0_i32_2 = arith.constant 0 : i32
    return %c0_i32, %c0_i32_0, %c0_i32_1 : i32, i32, i32
  }
  func.func @transform_5(%arg0: i32, %arg1: i32) -> (i32, i32, i32) {
    %c0_i32 = arith.constant 0 : i32
    %c0_i32_0 = arith.constant 0 : i32
    %c0_i32_1 = arith.constant 0 : i32
    %c0_i32_2 = arith.constant 0 : i32
    return %c0_i32, %c0_i32_0, %c0_i32_1 : i32, i32, i32
  }
  func.func @transform_6(%arg0: i32, %arg1: i32) -> (i32, i32, i32) {
    %c0_i32 = arith.constant 0 : i32
    %c0_i32_0 = arith.constant 0 : i32
    %c0_i32_1 = arith.constant 0 : i32
    %c0_i32_2 = arith.constant 0 : i32
    return %c0_i32, %c0_i32_0, %c0_i32_1 : i32, i32, i32
  }
  func.func @transform_7(%arg0: i32, %arg1: i32) -> (i32, i32, i32) {
    %c0_i32 = arith.constant 0 : i32
    %c0_i32_0 = arith.constant 0 : i32
    %c0_i32_1 = arith.constant 0 : i32
    %c0_i32_2 = arith.constant 0 : i32
    return %c0_i32, %c0_i32_0, %c0_i32_1 : i32, i32, i32
  }
  func.func @transform_8(%arg0: i32, %arg1: i32) -> (i32, i32, i32) {
    %c0_i32 = arith.constant 0 : i32
    %c0_i32_0 = arith.constant 0 : i32
    %c0_i32_1 = arith.constant 0 : i32
    %c0_i32_2 = arith.constant 0 : i32
    return %c0_i32, %c0_i32_0, %c0_i32_1 : i32, i32, i32
  }
  func.func @transform_9(%arg0: i32, %arg1: i32) -> (i32, i32) {
    %c0_i32 = arith.constant 0 : i32
    %c0_i32_0 = arith.constant 0 : i32
    %c0_i32_1 = arith.constant 0 : i32
    return %c0_i32, %c0_i32_0 : i32, i32
  }
  func.func @transform_10(%arg0: i32, %arg1: i32) -> (i32, i32, i32) {
    %c0_i32 = arith.constant 0 : i32
    %c0_i32_0 = arith.constant 0 : i32
    return %arg0, %arg1, %c0_i32 : i32, i32, i32
  }
  func.func @transform_11(%arg0: i32, %arg1: i32) -> (i32, i32, i32) {
    %c0_i32 = arith.constant 0 : i32
    %c0_i32_0 = arith.constant 0 : i32
    return %arg0, %c0_i32, %arg1 : i32, i32, i32
  }
}

</mosaic_0001>

<bundles_post_ra>
// kernel: tpu_custom_call.1
= control target key start
LH: loop header
LB: loop body
LE: loop exit
PB: predicated region body
PF: predicated region fallthrough
CT: control target
= control target key end

     0   :  { %17 = vsyncpa [#allocation5], 0  ;;  %s2184_s0 = inlined_call_operand.vmem [shape: bf16[2,8,32], index: 0, kind: input, shape index: {}]   ;;  %s2185_s1 = inlined_call_operand.vmem [shape: f32[2,1,8], index: 1, kind: input, shape index: {}]   ;;  %s2186_s2 = inlined_call_operand.vmem [shape: bf16[4,32,8], index: 2, kind: input, shape index: {}]   ;;  %s2187_s3 = inlined_call_operand.vmem [shape: f32[4,1,8], index: 3, kind: input, shape index: {}]   ;;  %s2188_s4 = inlined_call_operand.vmem [shape: bf16[4,32,8], index: 4, kind: input, shape index: {}]   ;;  %s2189_s5 = inlined_call_operand.vmem [shape: f32[4,1,8], index: 5, kind: input, shape index: {}]   ;;  %s2190_s6 = inlined_call_operand.vmem [shape: bf16[4,32,8], index: 6, kind: input, shape index: {}]   ;;  %s2191_s7 = inlined_call_operand.vmem [shape: f32[4,1,8], index: 7, kind: input, shape index: {}]   ;;  %s2192_s8 = inlined_call_operand.vmem [shape: bf16[4,8,32], index: 8, kind: input, shape index: {}]   ;;  %s2193_s9 = inlined_call_operand.vmem [shape: f32[1,32], index: 9, kind: input, shape index: {}]   ;;  %s2194_s10 = inlined_call_operand.hbm [shape: f32[2,8,32], index: 10, kind: output, shape index: {0}]   ;;  %s2195_s11 = inlined_call_operand.hbm [shape: s32[2,1,8], index: 11, kind: output, shape index: {1}]  }
   0x1   :  { %19 = vsyncpa [#allocation5 + $0x1], 0 }
   0x2   :  { %20 = vsyncpa [#allocation7], 0 }
   0x3   :  { %22 = vsyncpa [#allocation7 + $0x1], 0  ;;  %s1841_s17 = smov 0   ;;  %s1843_s18 = smov 0  }
   0x4   :  { %s1845_s19 = smov 0   ;;  %s1847_s20 = smov 0  }
   0x5   :  { %s1849_s21 = smov 0   ;;  %s1851_s22 = smov 0  }
   0x6 LB: > { %2199 = sst [smem:[#allocation10_spill]] %s1766_s19  ;;  %s1375_s23 = sadd.s32 4294967295, %s1778_s22   ;;  %s1778_s22 = sphi %s1851_s22, %s28_s22   ;;  %s1774_s21 = sphi %s1849_s21, %s2210_s21   ;;  %s1770_s20 = sphi %s1847_s20, %s2209_s20   ;;  %s1766_s19 = sphi %s1845_s19, %s2208_s19   ;;  %s1762_s18 = sphi %s1843_s18, %s2212_s18   ;;  %s1758_s17 = sphi %s1841_s17, %s2211_s17  }
   0x7   : > { %2200 = sst [smem:[#allocation11_spill]] %s1774_s21  ;;  %s1376_s24 = sadd.s32 4294967294, %s1778_s22  }
   0x8   : > { %s40_s25 = sadd.s32 1, %s1774_s21  ;;  %s269_s26 = sadd.s32 1, %s1766_s19 }
   0x9   : > { %p42_p0 = scmp.ge.s32.totalorder %s40_s25, 2  ;;  %p279_p1 = scmp.ne.s32.totalorder %s1766_s19, %s1762_s18 }
   0xa   : > { %p280_p2 = scmp.eq.s32.totalorder %s1375_s23, 1  ;;  %p285_p3 = scmp.ne.s32.totalorder %s1762_s18, %s1758_s17 }
   0xb   : > { %s2214_s25 = smov (%p42_p0, %s40_s25), 0  ;;  %p286_p5 = scmp.eq.s32.totalorder %s1376_s24, 1 }
   0xc   : > { %2201 = sst [smem:[#allocation12_spill]] %s2214_s25  ;;  %p1881_p4 = por %p280_p2, %p279_p1 }
   0xd   : > { %s264_s28 = ssub.s32 %s1774_s21, %s2214_s25  ;;  %p1379_p6 = scmp.ge.s32.totalorder %s1778_s22, 1 }
   0xe   : > { %p267_p7 = scmp.eq.s32.totalorder %s264_s28, 0  ;;  %p1888_p8 = por %p286_p5, %p285_p3 }
   0xf   : > { %p369_p9 = scmp.lt.s32.totalorder %s1778_s22, 3 }
  0x10   : > { %s1894_s30 = scalar_select %p267_p7, %s1766_s19, %s269_s26  }
  0x11   : > { %p370_p10 = pnand %p1379_p6, %p369_p9 }
  0x12   : > { %2204 = sst [smem:[#allocation13_spill]] %s1894_s30  ;;  %p415_p11 = scmp.lt.s32.totalorder (!%p370_p10), %s1770_s20, 1 }
  0x13   : > { %373 = sbr.rel (%p370_p10) target bundleno = 1366 (0x556), region = 60  ;;  %s2123_s19 = sand.u32 (!%p370_p10), 1, %s1762_s18  }
  0x14   : > { %s1233_s16 = scalar_lea.sflag (!%p370_p10), [#allocation5], %s2123_s19 }
  0x18   : > { %v1559_v0 = vld [vmem:[%s2188_s4 + $0x18] sm:$0xff]  ;;  %v1555_v2 = vld [vmem:[%s2188_s4 + $0x8] sm:$0xff]  ;;  %v1558_v3 = vld [vmem:[%s2188_s4 + $0x10] sm:$0xff]  ;;  %s1913_s13 = scalar_select %p415_p11, %s1770_s20, 1  ;;  %vm448_vm0 = vcmask 261120   ;;  %vm466_vm1 = vcmask 60416  }
  0x19   : > { %v1561_v1 = vld [vmem:[%s2190_s6 + $0x18] sm:$0xff]  ;;  %531 = vmatpush.bf16.msra.mxu2 %v1559_v0  ;;  %v1560_v4 = vld [vmem:[%s2190_s6 + $0x10] sm:$0xff]  ;;  %458 = vmatpush.bf16.msra.mxu0 %v1555_v2  ;;  %v1554_v5 = vld [vmem:[%s2188_s4] sm:$0xff]  ;;  %vm779_vm2 = vcmask 64512   ;;  %vm819_vm3 = vcmask 1043456  }
  0x1a   : > { %569 = vmatpush.bf16.msra.mxu3 %v1561_v1  ;;  %v1569_v6 = vld [vmem:[%s2190_s6 + $0x38] sm:$0xff]  ;;  %s1381_s25 = sshll.u32 %s1913_s13, 2  ;;  %v1563_v7 = vld [vmem:[%s2188_s4 + $0x28] sm:$0xff]  ;;  %v1568_v8 = vld [vmem:[%s2190_s6 + $0x30] sm:$0xff] }
  0x1b   : > { %s418_s12 = scalar_lea.vmem %s2184_s0, %s1381_s25  ;;  %v1562_v10 = vld [vmem:[%s2188_s4 + $0x20] sm:$0xff]  ;;  %v1573_v11 = vld [vmem:[%s2186_s2 + $0x18] sm:$0xff]  ;;  %v1571_v12 = vld [vmem:[%s2186_s2 + $0x8] sm:$0xff]  ;;  %s421_s25 = scalar_lea.vmem %s2185_s1, %s1913_s13 }
  0x1c   : > { %v1931_v9 = vld [vmem:[%s418_s12] sm:$0xf]  ;;  %v1557_v13 = vld [vmem:[%s2190_s6 + $0x8] sm:$0xff]  ;;  %v1572_v14 = vld [vmem:[%s2186_s2 + $0x10] sm:$0xff]  ;;  %s1380_s13 = sshll.u32 %s2123_s19, 3 }
  0x1d   : > { %532 = vmatpush.bf16.msra.mxu2 %v1558_v3  ;;  %459 = vmatpush.bf16.msra.mxu0 %v1554_v5  ;;  %v1570_v15 = vld [vmem:[%s2186_s2] sm:$0xff]  ;;  %v1565_v18 = vld [vmem:[%s2190_s6 + $0x28] sm:$0xff]  ;;  %s408_s28 = scalar_lea.vmem [#allocation4], %s1380_s13  ;;  %s1688_s13 = scalar_lea.hbm %s2194_s10, 16 }
  0x1e   : > { %570 = vmatpush.bf16.msra.mxu3 %v1560_v4  ;;  %494 = vmatpush.bf16.msra.mxu1 %v1557_v13  ;;  %v1556_v16 = vld [vmem:[%s2190_s6] sm:$0xff]  ;;  %s1250_s14 = sshll.u32 %s408_s28, 4  ;;  %s1251_s14 = int_to_ptr.vmem [resolvable:$true] %s1250_s14 }
  0x1f   : > { %v1966_v17 = vld [vmem:[%s418_s12] sm:$0xf] }
  0x20   : > { %1413 = vmatmul.msk.bf16.vlgmr.msra.gmra.mxu2 %vm448_vm0, %v1931_v9  ;;  %1390 = vmatmul.msk.bf16.vlgmr.msra.gmra.mxu0 %vm448_vm0, %v1931_v9  ;;  %v1564_v19 = vld [vmem:[%s2190_s6 + $0x20] sm:$0xff] }
  0x21   : > { %607 = vmatpush.bf16.msrb.mxu0 %v1563_v7  ;;  %1427 = vmatmul.msk.bf16.vlgmr.msra.gmra.mxu3 %vm448_vm0, %v1931_v9  ;;  %v1639_v20 = vld [vmem:[%s2189_s5] ss:$0 sm:$0xff]  ;;  %v1640_v23 = vld [vmem:[%s2189_s5 + $0x1] ss:$0 sm:$0xff]  ;;  %v1642_v36 = vld [vmem:[%s2189_s5 + $0x2] ss:$0 sm:$0xff] }
  0x22   : > { %721 = vmatpush.bf16.msrb.mxu3 %v1569_v6  ;;  %495 = vmatpush.bf16.msra.mxu1 %v1556_v16  ;;  %v1641_v24 = vld [vmem:[%s2191_s7 + $0x1] ss:$0 sm:$0xff]  ;;  %v1646_v38 = vld [vmem:[%s2191_s7] ss:$0 sm:$0xff]  ;;  %v1643_v46 = vld [vmem:[%s2191_s7 + $0x3] ss:$0 sm:$0xff] }
  0x23   : > { %v1644_v56 = vld [vmem:[%s2187_s3] ss:$0 sm:$0xff]  ;;  %v1645_v59 = vld [vmem:[%s2187_s3 + $0x1] ss:$0 sm:$0xff]  ;;  %v1647_v4 = vld [vmem:[%s2191_s7 + $0x2] ss:$0 sm:$0xff] }
  0x25   : > { %608 = vmatpush.bf16.msrb.mxu0 %v1562_v10  ;;  %1399 = vmatmul.msk.bf16.vlgmr.msra.gmra.mxu1 %vm448_vm0, %v1931_v9  ;;  %v1567_v10 = vld [vmem:[%s2188_s4 + $0x38] sm:$0xff] }
  0x26   : > { %722 = vmatpush.bf16.msrb.mxu3 %v1568_v8  ;;  %645 = vmatpush.bf16.msrb.mxu1 %v1565_v18 }
  0x27   : > { %683 = vmatpush.bf16.msrb.mxu2 %v1567_v10  ;;  %v1511_v10 = vld [vmem:[%s2192_s8 + $0x4] sm:$0xf] }
  0x29   : > { %769 = vmatpush.bf16.msra.mxu0 %v1571_v12  ;;  %v1780_v12 = vmov 0  }
  0x2a   : > { %866 = vmatpush.bf16.msra.mxu3 %v1573_v11  ;;  %646 = vmatpush.bf16.msrb.mxu1 %v1564_v19  ;;  %v737_v11 = vld [vmem:[%s421_s25] sm:$0x1]  ;;  %s1551_s25 = sshll.u32 %s1770_s20, 3 }
  0x2b   : > { %vm738_vm4 = vcmp.eq.f32.partialorder %v737_v11, 0.0  ;;  %s1248_s23 = scalar_lea.hbm %s2194_s10, %s1551_s25 }
  0x2c   : > { %v799_v13 = vsel %vm738_vm4, 1, %v1780_v12  ;;  %v937_v12 = vsel %vm819_vm3, %v1511_v10, 0  ;;  %s1252_s15 = sshll.u32 %s1248_s23, 4  ;;  %s1253_s15 = int_to_ptr.hbm [resolvable:$true] %s1252_s15 }
  0x2d   : > { %770 = vmatpush.bf16.msra.mxu0 %v1570_v15  ;;  %s1682_s21 = sshra.s32 %s1253_s15, 4  ;;  %s1683_s21 = int_to_ptr.hbm [resolvable:$true] %s1682_s21 }
  0x2e   : > { %867 = vmatpush.bf16.msra.mxu3 %v1572_v14  ;;  %v800_v14 = vperm.slane %v799_v13, 0  ;;  %s1684_s25 = scalar_lea.hbm %s1683_s21, 8  ;;  %p1689_p1 = scmp.lt.s32.totalorder %s1683_s21, %s2194_s10 }
  0x2f   : > { %p1685_p12 = scmp.ne.s32.totalorder %s1683_s21, %s1684_s25  ;;  %p1690_p2 = scmp.lt.s32.totalorder %s1688_s13, %s1684_s25 }
  0x30   : > { %1441 = vmatmul.msk.bf16.vlgmr.msrb.gmra.mxu0 %vm448_vm0, %v1931_v9  ;;  %vm2027_vm5 = vcmp.eq.s32.totalorder %v800_v14, 1 }
  0x31   : > { %1483 = vmatmul.msk.bf16.vlgmr.msrb.gmra.mxu3 %vm448_vm0, %v1931_v9  ;;  %p1686_p13 = pnand %p1685_p12, %p1881_p4  ;;  %p1691_p3 = por %p1690_p2, %p1689_p1 }
  0x33   : > { %p1687_p0 = pneg %p1686_p13 }
  0x35   : > { %1455 = vmatmul.msk.bf16.vlgmr.msrb.gmra.mxu1 %vm448_vm0, %v1931_v9  ;;  %p1692_p5 = pnand %p1691_p3, %p1687_p0 }
  0x40   : > { %1492 = vmatmul.msk.bf16.vlgmr.msra.gmra.mxu0 %vm448_vm0, %v1966_v17 }
  0x41   : > { %1508 = vmatmul.msk.bf16.vlgmr.msra.gmra.mxu3 %vm448_vm0, %v1966_v17 }
  0x9d   : > { %v461_v21 = vpop.f32.mrf.mxu0 }
  0x9e   : > { %v462_v22 = vadd.f32 %v1639_v20, %v461_v21 }
  0xa0   : > { %v465_v25 = vpack.c.bf16 %v462_v22, %v462_v22 }
  0xa2   : > { %467 = vst.msk [vmem:[#allocation2] sm:$0xf] %vm466_vm1, %v465_v25  ;;  %v497_v39 = vpop.f32.mrf.mxu1  ;;  %v1566_v25 = vld [vmem:[%s2188_s4 + $0x30] sm:$0xff] }
  0xa3   : > { %v534_v26 = vpop.f32.mrf.mxu2  ;;  %v498_v40 = vadd.f32 %v1646_v38, %v497_v39  ;;  %684 = vmatpush.bf16.msrb.mxu2 %v1566_v25 }
  0xa4   : > { %v572_v27 = vpop.f32.mrf.mxu3  ;;  %v535_v28 = vadd.f32 %v1640_v23, %v534_v26  ;;  %v1575_v26 = vld [vmem:[%s2186_s2 + $0x28] sm:$0xff] }
  0xa5   : > { %v573_v29 = vadd.f32 %v1641_v24, %v572_v27  ;;  %v463_v32 = vpop.f32.mrf.mxu0  ;;  %v501_v44 = vpack.c.bf16 %v498_v40, %v498_v40  ;;  %v1574_v27 = vld [vmem:[%s2186_s2 + $0x20] sm:$0xff] }
  0xa6   : > { %v538_v30 = vpack.c.bf16 %v535_v28, %v535_v28  ;;  %1469 = vmatmul.msk.bf16.vlgmr.msrb.gmra.mxu2 %vm448_vm0, %v1931_v9  ;;  %v1577_v28 = vld [vmem:[%s2186_s2 + $0x38] sm:$0xff] }
  0xa7   : > { %v576_v31 = vpack.c.bf16 %v573_v29, %v573_v29  ;;  %502 = vst.msk [vmem:[#allocation3] sm:$0xf] %vm466_vm1, %v501_v44  ;;  %v1576_v29 = vld [vmem:[%s2186_s2 + $0x30] sm:$0xff] }
  0xa8   : > { %540 = vst.msk [vmem:[#allocation2 + $0x4] sm:$0xf] %vm466_vm1, %v538_v30 }
  0xa9   : > { %578 = vst.msk [vmem:[#allocation3 + $0x4] sm:$0xf] %vm466_vm1, %v576_v31  ;;  %v777_v33 = vld [vmem:[#allocation2] sm:$0xf] }
  0xaa   : > { %v784_v37 = vsel %vm779_vm2, %v777_v33, 0  ;;  %v499_v52 = vpop.f32.mrf.mxu1 }
  0xab   : > { %v536_v34 = vpop.f32.mrf.mxu2  ;;  %793 = vmatpush.bf16.xpose.msra.mxu1 %v784_v37 }
  0xac   : > { %v574_v35 = vpop.f32.mrf.mxu3  ;;  %v1648_v34 = vld [vmem:[%s2189_s5 + $0x3] ss:$0 sm:$0xff] }
  0xad   : > { %v610_v41 = vpop.f32.mrf.mxu0 }
  0xae   : > { %v611_v42 = vadd.f32 %v1642_v36, %v610_v41 }
  0xaf   : > { %v875_v43 = vld [vmem:[#allocation2 + $0x4] sm:$0xf] }
  0xb0   : > { %v877_v45 = vld [vmem:[#allocation3 + $0x4] sm:$0xf]  ;;  %v882_v47 = vsel %vm779_vm2, %v875_v43, 0  ;;  %v614_v48 = vpack.c.bf16 %v611_v42, %v611_v42 }
  0xb1   : > { %v915_v49 = vsel %vm819_vm3, %v877_v45, 0  ;;  %891 = vmatpush.bf16.xpose.msrb.mxu0 %v882_v47 }
  0xb2   : > { %616 = vst.msk [vmem:[#allocation2 + $0x8] sm:$0xf] %vm466_vm1, %v614_v48  ;;  %v648_v5 = vpop.f32.mrf.mxu1  ;;  %v778_v48 = vld [vmem:[#allocation3] sm:$0xf] }
  0xb3   : > { %924 = vmatpush.bf16.msrb.mxu1 %v915_v49  ;;  %v649_v6 = vadd.f32 %v1647_v4, %v648_v5  ;;  %v821_v49 = vsel %vm819_vm3, %v778_v48, 0 }
  0xb4   : > { %v724_v50 = vpop.f32.mrf.mxu3  ;;  %830 = vmatpush.bf16.msra.mxu2 %v821_v49  ;;  %v1548_v49 = vld [vmem:[%s2192_s8 + $0xc] sm:$0xf] }
  0xb5   : > { %v725_v51 = vadd.f32 %v1643_v46, %v724_v50  ;;  %v612_v54 = vpop.f32.mrf.mxu0  ;;  %v652_v7 = vpack.c.bf16 %v649_v6, %v649_v6  ;;  %v1649_v50 = vld [vmem:[%s2187_s3 + $0x2] ss:$0 sm:$0xff] }
  0xb7   : > { %v728_v53 = vpack.c.bf16 %v725_v51, %v725_v51  ;;  %654 = vst.msk [vmem:[#allocation3 + $0x8] sm:$0xf] %vm466_vm1, %v652_v7 }
  0xb8   : > { %946 = vmatpush.bf16.msrb.mxu2 %v937_v12 }
  0xb9   : > { %730 = vst.msk [vmem:[#allocation3 + $0xc] sm:$0xf] %vm466_vm1, %v728_v53  ;;  %v1008_v2 = vld [vmem:[#allocation2 + $0x8] sm:$0xf]  ;;  %999 = vmatpush.bf16.msra.mxu0 %v1575_v26  ;;  %v1650_v53 = vld [vmem:[%s2187_s3 + $0x3] ss:$0 sm:$0xff] }
  0xba   : > { %v1015_v3 = vsel %vm779_vm2, %v1008_v2, 0  ;;  %v650_v8 = vpop.f32.mrf.mxu1 }
  0xbc   : > { %v726_v55 = vpop.f32.mrf.mxu3 }
  0xbd   : > { %v772_v57 = vpop.f32.mrf.mxu0  ;;  %1000 = vmatpush.bf16.msra.mxu0 %v1574_v27 }
  0xbe   : > { %v773_v58 = vadd.f32 %v1644_v56, %v772_v57 }
  0xc0   : > { %v776_v60 = vpack.c.bf16 %v773_v58, %v773_v58  ;;  %v1125_v27 = vld [vmem:[#allocation3 + $0xc] sm:$0xf] }
  0xc2   : > { %1493 = vmatmul.msk.bf16.vlgmr.msra.gmra.mxu1 %vm779_vm2, %v776_v60 }
  0xc3   : > { %1024 = vmatpush.bf16.xpose.msra.mxu1 %v1015_v3 }
  0xc4   : > { %v869_v61 = vpop.f32.mrf.mxu3 }
  0xc5   : > { %v870_v62 = vadd.f32 %v1645_v59, %v869_v61  ;;  %v774_v0 = vpop.f32.mrf.mxu0 }
  0xc7   : > { %v873_v63 = vpack.c.bf16 %v870_v62, %v870_v62 }
  0xc9   : > { %1509 = vmatmul.msk.bf16.vlgmr.msrb.gmra.mxu0 %vm779_vm2, %v873_v63 }
  0xca   : > { %1114 = vmatpush.bf16.msrb.mxu0 %v1577_v28 }
  0xcc   : > { %v871_v1 = vpop.f32.mrf.mxu3 }
  0xce   : > { %1115 = vmatpush.bf16.msrb.mxu0 %v1576_v29  ;;  %v1163_v29 = vsel %vm819_vm3, %v1125_v27, 0 }
  0xd9   : > { %1527 = vmatmul.msk.bf16.vlgmr.msra.gmra.mxu0 %vm448_vm0, %v1966_v17 }
  0xe9   : > { %1545 = vmatmul.msk.bf16.vlgmr.msrb.gmra.mxu0 %vm448_vm0, %v1966_v17 }
 0x129   : > { %v686_v35 = vpop.f32.mrf.mxu2 }
 0x12a   : > { %v687_v36 = vadd.f32 %v1648_v34, %v686_v35 }
 0x12c   : > { %v690_v37 = vpack.c.bf16 %v687_v36, %v687_v36 }
 0x12e   : > { %692 = vst.msk [vmem:[#allocation2 + $0xc] sm:$0xf] %vm466_vm1, %v690_v37 }
 0x131   : > { %v688_v39 = vpop.f32.mrf.mxu2 }
 0x135   : > { %v1123_v43 = vld [vmem:[#allocation2 + $0xc] sm:$0xf] }
 0x136   : > { %v1130_v47 = vsel %vm779_vm2, %v1123_v43, 0 }
 0x13f   : > { %v795_v16 = vpop.f32.mrf.mxu1 }
 0x140   : > { %v2033_v18 = vsel %vm2027_vm5, -inf, %v795_v16 }
 0x141   : > { %v803_v19 = vsel %vm779_vm2, %v2033_v18, -inf }
 0x142   : > { %804 = vmax.xlane.f32.xlu1 %v803_v19 }
 0x146   : > { %v893_v20 = vpop.f32.mrf.mxu0 }
 0x147   : > { %v897_v21 = vsel %vm2027_vm5, -inf, %v893_v20  ;;  %v797_v23 = vpop.f32.mrf.mxu1 }
 0x148   : > { %v898_v22 = vsel %vm779_vm2, %v897_v21, -inf }
 0x149   : > { %899 = vmax.xlane.f32.xlu0 %v898_v22 }
 0x14e   : > { %v895_v24 = vpop.f32.mrf.mxu0 }
 0x14f   : > { %v1010_v24 = vld [vmem:[#allocation3 + $0x8] sm:$0xf] }
 0x150   : > { %v1048_v26 = vsel %vm819_vm3, %v1010_v24, 0 }
 0x156   : > { %v1002_v38 = vpop.f32.mrf.mxu0 }
 0x157   : > { %v1003_v51 = vadd.f32 %v1649_v50, %v1002_v38  ;;  %v1185_v50 = vsel %vm819_vm3, %v1548_v49, 0 }
 0x159   : > { %v1006_v52 = vpack.c.bf16 %v1003_v51, %v1003_v51  ;;  %v1207_v51 = vlaneseq }
 0x15e   : > { %v1004_v40 = vpop.f32.mrf.mxu0 }
 0x166   : > { %v1117_v41 = vpop.f32.mrf.mxu0 }
 0x167   : > { %v1118_v54 = vadd.f32 %v1650_v53, %v1117_v41 }
 0x169   : > { %v1121_v55 = vpack.c.bf16 %v1118_v54, %v1118_v54 }
 0x16e   : > { %v1119_v44 = vpop.f32.mrf.mxu0 }
 0x1b5   : > { %v805_v61 = vpop.xlane.xlu1 %804 }
 0x1b6   : > { %v806_v63 = vsub.f32 %v2033_v18, %v805_v61 }
 0x1b8   : > { %v807_v0 = vmul.f32 1.442695, %v806_v63 }
 0x1bc   : > { %v900_v9 = vpop.xlane.xlu0 %899 }
 0x1bd   : > { %v901_v30 = vsub.f32 %v897_v21, %v900_v9 }
 0x1bf   : > { %v902_v31 = vmul.f32 1.442695, %v901_v30  ;;  %v837_v30 = vld [vmem:[%s2192_s8] sm:$0xf] }
 0x1c1   : > { %1652 = vpow2.f32 %v902_v31 }
 0x1c7   : > { %v1653_v32 = vpop.eup %1652 }
 0x1c8   : > { %v904_v33 = vsel %vm779_vm2, %v1653_v32, 0.0 }
 0x1c9   : > { %905 = vadd.xlane.f32.xlu0 %v904_v33 }
 0x23c   : > { %v906_v17 = vpop.xlane.xlu0 %905 }
 0x23d   : > { %1654 = vrcp.f32 %v906_v17 }
 0x23e   : > { %1656 = vpow2.f32 %v807_v0 }
 0x243   : > { %v1655_v42 = vpop.eup %1654 }
 0x244   : > { %v2066_v45 = vmul.f32 %v1655_v42, %v1653_v32  ;;  %v1657_v4 = vpop.eup %1656  ;;  %v956_v32 = vsel %vm819_vm3, %v837_v30, 0 }
 0x245   : > { %v809_v6 = vsel %vm779_vm2, %v1657_v4, 0.0  ;;  %965 = vmatpush.bf16.msrb.mxu3 %v956_v32 }
 0x246   : > { %v910_v46 = vpack.c.bf16 %v2066_v45, %v2066_v45 }
 0x248   : > { %1510 = vmatmul.msk.bf16.vlgmr.msrb.gmra.mxu1 %vm779_vm2, %v910_v46 }
 0x249   : > { %1139 = vmatpush.bf16.xpose.msrb.mxu1 %v1130_v47 }
 0x258   : > { %1528 = vmatmul.msk.bf16.vlgmr.msra.gmra.mxu1 %vm779_vm2, %v1006_v52  ;;  %v2116_v52 = vand.u32 127, %v1207_v51 }
 0x268   : > { %1546 = vmatmul.msk.bf16.vlgmr.msrb.gmra.mxu1 %vm779_vm2, %v1121_v55 }
 0x2c5   : > { %v926_v56 = vpop.f32.mrf.mxu1 }
 0x2c6   : > { %v930_v28 = vpack.c.bf16 %v926_v56, %v926_v56 }
 0x2cd   : > { %v928_v57 = vpop.f32.mrf.mxu1 }
 0x2d5   : > { %v1026_v58 = vpop.f32.mrf.mxu1 }
 0x2d6   : > { %v1030_v59 = vsel %vm2027_vm5, -inf, %v1026_v58 }
 0x2d7   : > { %v1031_v60 = vsel %vm779_vm2, %v1030_v59, -inf }
 0x2d8   : > { %1032 = vmax.xlane.f32.xlu1 %v1031_v60 }
 0x2dd   : > { %v1028_v62 = vpop.f32.mrf.mxu1 }
 0x2e5   : > { %v1141_v1 = vpop.f32.mrf.mxu1 }
 0x2e6   : > { %v1145_v2 = vsel %vm2027_vm5, -inf, %v1141_v1 }
 0x2e7   : > { %v1146_v3 = vsel %vm779_vm2, %v1145_v2, -inf }
 0x2e8   : > { %1147 = vmax.xlane.f32.xlu2 %v1146_v3 }
 0x2ed   : > { %v1143_v5 = vpop.f32.mrf.mxu1 }
 0x2f0   : > { %810 = vadd.xlane.f32.xlu2 %v809_v6 }
 0x34b   : > { %v1033_v7 = vpop.xlane.xlu1 %1032 }
 0x34c   : > { %v1034_v8 = vsub.f32 %v1030_v59, %v1033_v7 }
 0x34e   : > { %v1035_v11 = vmul.f32 1.442695, %v1034_v8 }
 0x350   : > { %1658 = vpow2.f32 %v1035_v11  ;;  %v1651_v11 = vld [vmem:[%s2193_s9] ss:$0 sm:$0xff] }
 0x356   : > { %v1659_v13 = vpop.eup %1658 }
 0x357   : > { %v1037_v14 = vsel %vm779_vm2, %v1659_v13, 0.0 }
 0x358   : > { %1038 = vadd.xlane.f32.xlu0 %v1037_v14 }
 0x35b   : > { %v1148_v15 = vpop.xlane.xlu2 %1147 }
 0x35c   : > { %v1149_v16 = vsub.f32 %v1145_v2, %v1148_v15 }
 0x35e   : > { %v1150_v18 = vmul.f32 1.442695, %v1149_v16 }
 0x360   : > { %1660 = vpow2.f32 %v1150_v18 }
 0x363   : > { %v811_v19 = vpop.xlane.xlu2 %810 }
 0x364   : > { %1662 = vrcp.f32 %v811_v19 }
 0x366   : > { %v1661_v20 = vpop.eup %1660 }
 0x367   : > { %v1152_v21 = vsel %vm779_vm2, %v1661_v20, 0.0 }
 0x368   : > { %1153 = vadd.xlane.f32.xlu1 %v1152_v21 }
 0x36a   : > { %v1663_v22 = vpop.eup %1662 }
 0x36b   : > { %v813_v23 = vmul.f32 %v1663_v22, %v1657_v4 }
 0x36d   : > { %v815_v25 = vpack.c.bf16 %v813_v23, %v813_v23  ;;  %v909_v36 = vadd.f32 %v2066_v45, %v813_v23  ;;  %v1530_v45 = vld [vmem:[%s2192_s8 + $0x8] sm:$0xf] }
 0x36e   : > { %v1070_v48 = vsel %vm819_vm3, %v1530_v45, 0 }
 0x36f   : > { %1494 = vmatmul.msk.bf16.vlgmr.msra.gmra.mxu2 %vm779_vm2, %v815_v25  ;;  %1079 = vmatpush.bf16.msra.mxu3 %v1070_v48 }
 0x370   : > { %1057 = vmatpush.bf16.msra.mxu2 %v1048_v26 }
 0x37f   : > { %1512 = vmatmul.msk.bf16.vlgmr.msrb.gmra.mxu2 %vm779_vm2, %v930_v28 }
 0x380   : > { %1172 = vmatpush.bf16.msrb.mxu2 %v1163_v29 }
 0x3cb   : > { %v1039_v9 = vpop.xlane.xlu0 %1038 }
 0x3cc   : > { %1664 = vrcp.f32 %v1039_v9 }
 0x3d2   : > { %v1665_v31 = vpop.eup %1664 }
 0x3d3   : > { %v1041_v33 = vmul.f32 %v1665_v31, %v1659_v13 }
 0x3d5   : > { %v1043_v34 = vpack.c.bf16 %v1041_v33, %v1041_v33  ;;  %v1042_v39 = vadd.f32 %v1041_v33, %v909_v36 }
 0x3d7   : > { %1529 = vmatmul.msk.bf16.vlgmr.msra.gmra.mxu2 %vm779_vm2, %v1043_v34 }
 0x3db   : > { %v1154_v35 = vpop.xlane.xlu1 %1153 }
 0x3dc   : > { %1666 = vrcp.f32 %v1154_v35 }
 0x3e2   : > { %v1667_v37 = vpop.eup %1666 }
 0x3e3   : > { %v1156_v38 = vmul.f32 %v1667_v37, %v1661_v20 }
 0x3e5   : > { %v1158_v40 = vpack.c.bf16 %v1156_v38, %v1156_v38  ;;  %v1157_v41 = vadd.f32 %v1156_v38, %v1042_v39 }
 0x3e7   : > { %1547 = vmatmul.msk.bf16.vlgmr.msrb.gmra.mxu2 %vm779_vm2, %v1158_v40  ;;  %v1209_v17 = vsel %vm779_vm2, %v1157_v41, -inf }
 0x3e8   : > { %1210 = vmax.xlane.f32.xlu2 %v1209_v17 }
 0x3f2   : > { %v832_v42 = vpop.f32.mrf.mxu2 }
 0x3f3   : > { %v836_v43 = vpack.c.bf16 %v832_v42, %v832_v42 }
 0x3f5   : > { %1513 = vmatmul.msk.bf16.vlgmr.msrb.gmra.mxu3 %vm779_vm2, %v836_v43 }
 0x3f6   : > { %1194 = vmatpush.bf16.msrb.mxu3 %v1185_v50 }
 0x3fa   : > { %v834_v44 = vpop.f32.mrf.mxu2 }
 0x402   : > { %v948_v46 = vpop.f32.mrf.mxu2 }
 0x40a   : > { %v950_v47 = vpop.f32.mrf.mxu2 }
 0x45a   : > { %v1059_v53 = vpop.f32.mrf.mxu2 }
 0x45b   : > { %v1063_v54 = vpack.c.bf16 %v1059_v53, %v1059_v53  ;;  %v1211_v55 = vpop.xlane.xlu2 %1210 }
 0x45c   : > { %vm1212_vm6 = vcmp.eq.f32.partialorder %v1157_v41, %v1211_v55 }
 0x45d   : > { %v1213_v56 = vsel %vm1212_vm6, %v2116_v52, 8  ;;  %1531 = vmatmul.msk.bf16.vlgmr.msra.gmra.mxu3 %vm779_vm2, %v1063_v54 }
 0x45e   : > { %v1214_v57 = vsel %vm779_vm2, %v1213_v56, 2147483647 }
 0x45f   : > { %v1216_v58 = vshra.s32 %v1214_v57, 16  ;;  %v1215_v2 = vand.u32 65535, %v1214_v57 }
 0x461   : > { %v1218_v59 = vcvt.s32.f32 %v1216_v58  ;;  %v1217_v4 = vcvt.s32.f32 %v1215_v2 }
 0x462   : > { %v1061_v60 = vpop.f32.mrf.mxu2 }
 0x463   : > { %1219 = vmin.xlane.f32.xlu0 %v1218_v59 }
 0x46a   : > { %v1174_v61 = vpop.f32.mrf.mxu2 }
 0x46b   : > { %v1178_v62 = vpack.c.bf16 %v1174_v61, %v1174_v61 }
 0x46d   : > { %1549 = vmatmul.msk.bf16.vlgmr.msrb.gmra.mxu3 %vm779_vm2, %v1178_v62 }
 0x472   : > { %v1176_v63 = vpop.f32.mrf.mxu2 }
 0x478   : > { %v967_v0 = vpop.f32.mrf.mxu3 }
 0x479   : > { %v968_v8 = vadd.f32 %v967_v0, %v948_v46 }
 0x480   : > { %v969_v1 = vpop.f32.mrf.mxu3 }
 0x4d6   : > { %v1220_v3 = vpop.xlane.xlu0 %1219 }
 0x4d7   : > { %vm1221_vm7 = vcmp.eq.f32.partialorder %v1218_v59, %v1220_v3 }
 0x4d8   : > { %v1222_v5 = vsel %vm1221_vm7, %v1217_v4, inf }
 0x4d9   : > { %1223 = vmin.xlane.f32.xlu1 %v1222_v5 }
 0x4e0   : > { %v1081_v6 = vpop.f32.mrf.mxu3 }
 0x4e1   : > { %v1085_v10 = vadd.f32 %v1081_v6, %v968_v8 }
 0x4e8   : > { %v1083_v7 = vpop.f32.mrf.mxu3 }
 0x4f0   : > { %v1196_v12 = vpop.f32.mrf.mxu3 }
 0x4f1   : > { %v1200_v13 = vadd.f32 %v1196_v12, %v1085_v10 }
 0x4f3   : > { %v1205_v14 = vadd.f32 %v1651_v11, %v1200_v13 }
 0x4f5   : > { %1206 = vst.msk [vmem:[%s408_s28] sm:$0xff] %vm448_vm0, %v1205_v14 }
 0x4f6   : > { %1695 = shalt.err (!%p1692_p5)
}
 0x4f7   : > { %1578 = dma.vmem_to_hbm [thread:$0]  (%p1881_p4), %s1251_s14, 128, %s1253_s15, %s1233_s16   ;;  %v1226_v16 = vcvt.f32.s32 %v1220_v3  ;;  %vm1230_vm8 = vcmask 57344  }
 0x4f8   : > { %v1198_v15 = vpop.f32.mrf.mxu3  ;;  %s1262_s30 = scalar_lea.hbm %s2195_s11, %s1770_s20  ;;  %s414_s21 = scalar_lea.vmem [#allocation6], %s2123_s19 }
 0x4f9   : > { %v1227_v19 = vshll.u32 %v1226_v16, 16  ;;  %s1264_s25 = sshll.u32 %s414_s21, 4  ;;  %s1266_s12 = sshll.u32 %s1262_s30, 4  ;;  %s1265_s25 = int_to_ptr.vmem [resolvable:$true] %s1264_s25  ;;  %s1267_s12 = int_to_ptr.hbm [resolvable:$true] %s1266_s12 }
 0x4fa   : > { %s1238_s14 = scalar_lea.sflag [#allocation7], %s2123_s19  ;;  %s1710_s15 = sshra.s32 %s1267_s12, 4  ;;  %s1711_s15 = int_to_ptr.hbm [resolvable:$true] %s1710_s15 }
 0x4fb   : > { %s1712_s16 = scalar_lea.hbm %s1711_s15, 1  ;;  %s1716_s24 = scalar_lea.hbm %s2195_s11, 2 }
 0x4fc   : > { %p1713_p6 = scmp.ne.s32.totalorder %s1711_s15, %s1712_s16  ;;  %p1717_p10 = scmp.lt.s32.totalorder %s1711_s15, %s2195_s11 }
 0x4fd   : > { %p1718_p11 = scmp.lt.s32.totalorder %s1716_s24, %s1712_s16 }
 0x4fe   : > { %p1714_p7 = pnand %p1713_p6, %p1881_p4 }
 0x4ff   : > { %p1719_p12 = por %p1718_p11, %p1717_p10 }
 0x500   : > { %p1715_p9 = pneg %p1714_p7 }
 0x502   : > { %p1720_p13 = pnand %p1719_p12, %p1715_p9 }
 0x54c   : > { %v1224_v18 = vpop.xlane.xlu1 %1223 }
 0x54d   : > { %v1225_v20 = vcvt.f32.s32 %v1224_v18 }
 0x54f   : > { %v1228_v21 = vadd.s32 %v1227_v19, %v1225_v20 }
 0x551   : > { %v1229_v22 = vperm.slane %v1228_v21, %v2116_v52 }
 0x553   : > { %1231 = vst.msk [vmem:[%s414_s21] sm:$0x1] %vm1230_vm8, %v1229_v22 }
 0x554   : > { %1723 = shalt.err (!%p1720_p13)
}
 0x555   : > { %1579 = dma.vmem_to_hbm [thread:$0]  (%p1881_p4), %s1265_s25, 16, %s1267_s12, %s1238_s14  }
 0x556 PF: > { %p1589_p0 = scmp.ge.s32.totalorder %s1778_s22, 2  ;;  %s1278_s19 = sand.u32 1, %s1758_s17  }
 0x557   : > { %s1279_s28 = scalar_lea.sflag [#allocation5], %s1278_s19 }
 0x558   : > { %p1583_p1 = pnand %p1589_p0, %p1888_p8 }
 0x55a   : > { %p1584_p2 = pneg %p1583_p1 }
 0x55c   : > { %1749 = dma.done.wait (%p1584_p2), %s1279_s28, 128  }
 0x55d   : > { %1751 = vsyncadd (%p1584_p2), %s1279_s28, 4294967168  ;;  %s1289_s30 = scalar_lea.sflag [#allocation7], %s1278_s19 }
 0x55e   : > { %1753 = dma.done.wait (%p1584_p2), %s1289_s30, 16  }
 0x55f   : > { %1755 = vsyncadd (%p1584_p2), %s1289_s30, 4294967280  ;;  %s28_s22 = sadd.s32 1, %s1778_s22   ;;  %s2207_s27 = sld [smem:[#allocation10_spill]] }
 0x560   : > { %p25_p3 = scmp.ge.s32.totalorder %s28_s22, 4   ;;  %s2208_s19 = sld [smem:[#allocation13_spill]] }
 0x561   : > { %s2209_s20 = sld [smem:[#allocation11_spill]]  ;;  %s2211_s17 = smov %s1762_s18 }
 0x562   : > { %s2210_s21 = sld [smem:[#allocation12_spill]]  ;;  %27 = sbr.rel (!%p25_p3) target bundleno = 6 (0x6), region = 153 }
 0x565   : > { %s2212_s18 = smov %s2207_s27 }
 0x567   :  { %1294 = vsyncpa [#allocation5], 1 }
 0x568   :  { %1296 = vsyncpa [#allocation5 + $0x1], 1 }
 0x569   :  { %1297 = vsyncpa [#allocation7], 1 }
 0x56a   :  { %1299 = vsyncpa [#allocation7 + $0x1], 1 }

</bundles_post_ra>
